<compile_context>
chip_gen: v5e
topology: v5e:2x2
jax: 0.10.0
libtpu: 0.0.40
codegen_flags: <defaults>
</compile_context>

<pallas_src>
import functools

import numpy as np
import jax
import jax.numpy as jnp
from jax.experimental import pallas as pl
from jax.experimental.pallas import tpu as pltpu


# ----------------- generation-aware tiling / compiler params -----------------
def _select_tiling():
    # Defaults assume the small-VMEM, 2-TensorCore generation (v7x):
    # 64 MiB physical VMEM -> 48 MiB scoped limit, 256-row matmul tiles.
    tm_max, vmem_limit, is_v7x = 256, 48 * 1024 * 1024, True
    try:
        cap = pltpu.get_tpu_info().vmem_capacity_bytes
        if cap >= 100 * 1024 * 1024:          # v5e / v6e: 128 MiB VMEM, 1 TC
            # review: 64 MiB (not 96) leaves compiler scratch/spill headroom
            tm_max, vmem_limit, is_v7x = 512, 64 * 1024 * 1024, False
    except Exception:
        pass
    return tm_max, vmem_limit, is_v7x


TM_MAX, VMEM_LIMIT, IS_V7X = _select_tiling()

_CORE_PAR = []     # [] = unprobed; [enum or None]
_PMODE = []        # [] = unprobed; [pl.Buffered(1) or None]
_DW_FAST = []      # [] = unprobed; [bool]


def _lead_semantics():
    """CORE_PARALLEL for the leading grid axis (v7x only, probed once)."""
    if not _CORE_PAR:
        lead = None
        cp = getattr(pltpu, "CORE_PARALLEL", None)
        if IS_V7X and cp is not None:
            def k(x_ref, o_ref):
                o_ref[...] = x_ref[...] * 2.0
            try:
                out = pl.pallas_call(
                    k,
                    out_shape=jax.ShapeDtypeStruct((16, 128), jnp.float32),
                    grid=(2,),
                    in_specs=[pl.BlockSpec((8, 128), lambda i: (i, 0))],
                    out_specs=pl.BlockSpec((8, 128), lambda i: (i, 0)),
                    compiler_params=pltpu.CompilerParams(
                        dimension_semantics=(cp,),
                        vmem_limit_bytes=VMEM_LIMIT),
                )(jnp.ones((16, 128), jnp.float32))
                jax.block_until_ready(out)
                lead = cp
            except Exception:
                lead = None
        _CORE_PAR.append(lead)
    return _CORE_PAR[0]


def _cparams(grid=(1,)):
    lead = _lead_semantics() if grid and grid[0] > 1 else None
    if lead is not None:
        arb = getattr(pltpu, "ARBITRARY", "arbitrary")
        sem = (lead,) + (arb,) * (len(grid) - 1)
    else:
        sem = ("parallel",) + ("arbitrary",) * (len(grid) - 1)
    return pltpu.CompilerParams(dimension_semantics=sem,
                                vmem_limit_bytes=VMEM_LIMIT)


def _probe_buffered_one():
    """Single-buffering for grid-invariant operands (weights / BN / SE)."""
    try:
        mode = pl.Buffered(1)

        def k(x_ref, o_ref):
            o_ref[...] = x_ref[...] + 1.0

        out = pl.pallas_call(
            k,
            out_shape=jax.ShapeDtypeStruct((8, 128), jnp.float32),
            grid=(1,),
            in_specs=[pl.BlockSpec((8, 128), lambda i: (0, 0),
                                   pipeline_mode=mode)],
            out_specs=pl.BlockSpec((8, 128), lambda i: (0, 0)),
            compiler_params=_cparams((1,)),
        )(jnp.zeros((8, 128), jnp.float32))
        jax.block_until_ready(out)
        return mode
    except Exception:
        return None


def _weight_pipeline_mode():
    if not _PMODE:
        _PMODE.append(_probe_buffered_one())
    return _PMODE[0]


def _const_spec(block_shape, index_map):
    """BlockSpec for a grid-invariant operand (single-buffered if supported)."""
    mode = _weight_pipeline_mode()
    if mode is not None:
        return pl.BlockSpec(block_shape, index_map, pipeline_mode=mode)
    return pl.BlockSpec(block_shape, index_map)


def _probe_dw_fast():
    """Probe in-kernel halo padding (unaligned VMEM scratch store) + strided
    VMEM window reads (pl.ds(..., stride=2)).  Falls back to the old XLA
    pad / stride-1 path if this build rejects either."""
    def k(x_ref, o_ref, pad_ref):
        pad_ref[...] = jnp.zeros_like(pad_ref)
        pad_ref[2:18, 2:18, :] = x_ref[0].astype(jnp.float32)
        v = pad_ref[pl.ds(1, 8, stride=2), pl.ds(1, 8, stride=2), :]
        o_ref[0] = v.astype(o_ref.dtype)

    try:
        out = pl.pallas_call(
            k,
            out_shape=jax.ShapeDtypeStruct((1, 8, 8, 128), jnp.bfloat16),
            grid=(1,),
            in_specs=[pl.BlockSpec((1, 16, 16, 128), lambda i: (0, 0, 0, 0))],
            out_specs=pl.BlockSpec((1, 8, 8, 128), lambda i: (0, 0, 0, 0)),
            scratch_shapes=[pltpu.VMEM((20, 20, 128), jnp.float32)],
            compiler_params=_cparams((1,)),
        )(jnp.ones((1, 16, 16, 128), jnp.bfloat16))
        out = np.asarray(jax.block_until_ready(out))
        return bool(out[0, 0, 0, 0] == 0 and out[0, 3, 0, 0] == 0
                    and out[0, 1, 1, 0] == 1 and out[0, 7, 7, 0] == 1)
    except Exception:
        return False


def _dw_fast():
    if not _DW_FAST:
        _DW_FAST.append(_probe_dw_fast())
    return _DW_FAST[0]


def _prime_probes():
    _lead_semantics()
    _weight_pipeline_mode()
    _dw_fast()


# ------------------------------- Pallas kernels -------------------------------
def _silu(x):
    return x * jax.nn.sigmoid(x)


def _mm_bn_kernel(x_ref, w_ref, s_ref, b_ref, o_ref, *, act):
    # (TM, K) @ (K, Cout) on the MXU (bf16 in, f32 accumulate) + folded-BN
    # affine + optional SiLU, fused in VMEM.
    acc = jnp.dot(x_ref[...], w_ref[...], preferred_element_type=jnp.float32)
    acc = acc * s_ref[...] + b_ref[...]
    if act == "silu":
        acc = _silu(acc)
    o_ref[...] = acc.astype(o_ref.dtype)


def _proj_gate_kernel(x_ref, g_ref, w_ref, s_ref, b_ref, o_ref):
    # project 1x1 conv with the SE sigmoid gate fused into the matmul input:
    # out = ((x * gate_n) @ W) * scale + bias     (project conv has no act)
    xg = x_ref[0] * g_ref[0]
    acc = jnp.dot(xg, w_ref[...], preferred_element_type=jnp.float32)
    acc = acc * s_ref[...] + b_ref[...]
    o_ref[0] = acc.astype(o_ref.dtype)


def _proj_gate_res_kernel(x_ref, g_ref, w_ref, s_ref, b_ref, r_ref, o_ref):
    # same, with the MBConv residual fused (added after the BN affine).
    xg = x_ref[0] * g_ref[0]
    acc = jnp.dot(xg, w_ref[...], preferred_element_type=jnp.float32)
    acc = acc * s_ref[...] + b_ref[...] + r_ref[0].astype(jnp.float32)
    o_ref[0] = acc.astype(o_ref.dtype)


def _dw_bn_silu_kernel(x_ref, w_ref, s_ref, b_ref, o_ref, sum_ref, xpad_ref,
                       *, k, stride, pad_in_kernel):
    # Depthwise k x k conv + folded BN + SiLU for one batch sample.
    # The unpadded bf16 input tile is cast to f32 ONCE into a zero-halo'd
    # VMEM scratch (no jnp.pad HBM round trip), then k*k taps are accumulated
    # from shifted (optionally stride-2) windows of that scratch.  The
    # per-channel spatial sum of the activation is emitted as a tiny second
    # output so Squeeze-Excitation needs no extra full-tensor pass.
    p = (k - 1) // 2
    Ho, Wo, C = o_ref.shape[1], o_ref.shape[2], o_ref.shape[3]
    if pad_in_kernel:
        Hi, Wi = x_ref.shape[1], x_ref.shape[2]
        xpad_ref[...] = jnp.zeros_like(xpad_ref)
        xpad_ref[p:p + Hi, p:p + Wi, :] = x_ref[0].astype(jnp.float32)
    else:
        # fallback path: input already spatially padded in HBM
        xpad_ref[...] = x_ref[0].astype(jnp.float32)
    acc = jnp.zeros((Ho, Wo, C), jnp.float32)
    for dy in range(k):
        for dx in range(k):
            if stride == 1:
                win = xpad_ref[dy:dy + Ho, dx:dx + Wo, :]
            else:
                win = xpad_ref[pl.ds(dy, Ho, stride=stride),
                               pl.ds(dx, Wo, stride=stride), :]
            acc = acc + win * w_ref[dy * k + dx]
    acc = acc * s_ref[...] + b_ref[...]
    act = _silu(acc)
    o_ref[0] = act.astype(o_ref.dtype)
    ssum = jnp.sum(act, axis=0, keepdims=True)            # (1, Wo, C)
    sum_ref[...] = jnp.sum(ssum, axis=1, keepdims=True)   # (1, 1, C)


def _se_fc_kernel(m_ref, w1_ref, b1_ref, w2_ref, b2_ref, g_ref):
    # Squeeze-Excitation gate from the (already pooled) per-channel means:
    # fc1 + SiLU -> fc2 + sigmoid, batched over the whole batch at once.
    h = jnp.dot(m_ref[...], w1_ref[...], preferred_element_type=jnp.float32)
    h = _silu(h + b1_ref[...])
    g = jnp.dot(h, w2_ref[...], preferred_element_type=jnp.float32)
    g_ref[...] = jax.nn.sigmoid(g + b2_ref[...])


def _head_pool_fc_kernel(x_ref, w_ref, b_ref, o_ref):
    # Fused AdaptiveAvgPool2d((1,1)) + Linear(2560 -> embedding_dim) +
    # F.normalize(p=2, dim=1, eps=1e-12).  Dropout(0.5) is identity here.
    feat = jnp.mean(x_ref[...].astype(jnp.float32), axis=1)        # (N, C)
    emb = jnp.dot(feat, w_ref[...], preferred_element_type=jnp.float32)
    emb = emb + b_ref[...]
    nrm = jnp.sqrt(jnp.sum(emb * emb, axis=-1, keepdims=True))
    o_ref[...] = emb / jnp.maximum(nrm, 1e-12)


# ------------------------------- Pallas wrappers ------------------------------
def _round_up(x, m):
    return ((x + m - 1) // m) * m


def _pick_tm(M):
    """Fixed-width row tile (cdiv grid; the ragged tail block is masked by
    Pallas).  Only on v7x force >= 2 grid steps so both TensorCores work."""
    tm = min(TM_MAX, _round_up(M, 8))
    if IS_V7X and M >= 16 and pl.cdiv(M, tm) < 2:
        tm = _round_up(pl.cdiv(M, 2), 8)
    return tm


def matmul_bn_act(x2d, w, scale, bias, *, act):
    """out = act((x2d @ w) * scale + bias), tiled over rows (bf16 out)."""
    M, K = x2d.shape
    Cout = w.shape[1]
    TM = _pick_tm(M)
    grid = (pl.cdiv(M, TM),)
    return pl.pallas_call(
        functools.partial(_mm_bn_kernel, act=act),
        out_shape=jax.ShapeDtypeStruct((M, Cout), jnp.bfloat16),
        grid=grid,
        in_specs=[pl.BlockSpec((TM, K), lambda i: (i, 0)),
                  _const_spec((K, Cout), lambda i: (0, 0)),
                  _const_spec((1, Cout), lambda i: (0, 0)),
                  _const_spec((1, Cout), lambda i: (0, 0))],
        out_specs=pl.BlockSpec((TM, Cout), lambda i: (i, 0)),
        compiler_params=_cparams(grid),
    )(x2d, w, scale, bias)


@functools.partial(jax.jit, static_argnames=("act",))
def conv1x1_bn_act(x, w, scale, bias, *, act):
    """1x1 conv (matmul) + folded BN + SiLU (expand / head convs)."""
    N, H, W, Cin = x.shape
    Cout = w.shape[1]
    out = matmul_bn_act(x.reshape(N * H * W, Cin), w, scale, bias, act=act)
    return out.reshape(N, H, W, Cout)


@jax.jit
def stem_conv_bn_silu(x, w, scale, bias):
    """3x3 stride-2 stem conv (Cin=3) + BN + SiLU.  The im2col patch matrix
    is only (N*Ho*Wo, 27), negligible; every other spatial conv in B7 is
    depthwise and never builds a patch matrix."""
    N, H, W, C = x.shape
    Ho, Wo = H // 2, W // 2
    xp = jnp.pad(x, ((0, 0), (1, 1), (1, 1), (0, 0)))
    cols = []
    for dy in range(3):
        for dx in range(3):
            cols.append(xp[:, dy:dy + 2 * (Ho - 1) + 1:2,
                           dx:dx + 2 * (Wo - 1) + 1:2, :])
    patches = jnp.stack(cols, axis=3).reshape(N * Ho * Wo, 9 * C)
    out = matmul_bn_act(patches, w, scale, bias, act="silu")
    return out.reshape(N, Ho, Wo, w.shape[1])


@functools.partial(jax.jit, static_argnames=("k", "stride"))
def depthwise_bn_silu(x, w_taps, scale, bias, *, k, stride):
    """Depthwise k x k conv (padding k//2, stride 1 or 2) + folded BN + SiLU.
    Returns (activation, per-channel spatial mean); the mean feeds SE so no
    separate squeeze pass over the full activation is needed."""
    N, H, W, C = x.shape
    p = (k - 1) // 2
    fast = _dw_fast()
    ks = stride if (stride == 1 or fast) else 1
    Ho = (H + 2 * p - k) // ks + 1
    Wo = (W + 2 * p - k) // ks + 1
    Hp, Wp = H + 2 * p, W + 2 * p
    if fast:
        xin, Hi, Wi = x, H, W
    else:
        # TODO(synk): fallback only -- jnp.pad costs one extra HBM round trip
        xin, Hi, Wi = jnp.pad(x, ((0, 0), (p, p), (p, p), (0, 0))), Hp, Wp
    grid = (N,)
    out, sums = pl.pallas_call(
        functools.partial(_dw_bn_silu_kernel, k=k, stride=ks,
                          pad_in_kernel=fast),
        out_shape=(jax.ShapeDtypeStruct((N, Ho, Wo, C), jnp.bfloat16),
                   jax.ShapeDtypeStruct((N, 1, C), jnp.float32)),
        grid=grid,
        in_specs=[pl.BlockSpec((1, Hi, Wi, C), lambda n: (n, 0, 0, 0)),
                  _const_spec((k * k, 1, C), lambda n: (0, 0, 0)),
                  _const_spec((1, C), lambda n: (0, 0)),
                  _const_spec((1, C), lambda n: (0, 0))],
        out_specs=(pl.BlockSpec((1, Ho, Wo, C), lambda n: (n, 0, 0, 0)),
                   pl.BlockSpec((1, 1, C), lambda n: (n, 0, 0))),
        scratch_shapes=[pltpu.VMEM((Hp, Wp, C), jnp.float32)],
        compiler_params=_cparams(grid),
    )(xin, w_taps, scale, bias)
    if ks != stride:
        out = out[:, ::stride, ::stride, :]
        mean = jnp.mean(out.astype(jnp.float32), axis=(1, 2))
    else:
        mean = sums[:, 0, :] * (1.0 / float(Ho * Wo))
    return out, mean


@jax.jit
def se_gate(mean, w1, b1, w2, b2):
    """SE gate from the pooled means: sigmoid(silu(m @ w1 + b1) @ w2 + b2)."""
    N, C = mean.shape
    S = w1.shape[1]
    grid = (1,)
    return pl.pallas_call(
        _se_fc_kernel,
        out_shape=jax.ShapeDtypeStruct((N, C), jnp.float32),
        grid=grid,
        in_specs=[pl.BlockSpec((N, C), lambda i: (0, 0)),
                  _const_spec((C, S), lambda i: (0, 0)),
                  _const_spec((1, S), lambda i: (0, 0)),
                  _const_spec((S, C), lambda i: (0, 0)),
                  _const_spec((1, C), lambda i: (0, 0))],
        out_specs=pl.BlockSpec((N, C), lambda i: (0, 0)),
        compiler_params=_cparams(grid),
    )(mean, w1, b1, w2, b2)


@jax.jit
def conv1x1_gate_proj(h, gate, w, scale, bias, residual=None):
    """Project 1x1 conv with the SE gate fused into the matmul input and an
    optional fused residual add; gridded (sample, row-tile) so the gate is a
    per-sample (1, C) operand."""
    N, H, W, Cin = h.shape
    Cout = w.shape[1]
    HW = H * W
    TM = HW if HW <= TM_MAX else TM_MAX
    x3 = h.reshape(N, HW, Cin)
    g3 = gate.astype(jnp.bfloat16).reshape(N, 1, Cin)
    grid = (N, pl.cdiv(HW, TM))
    in_specs = [pl.BlockSpec((1, TM, Cin), lambda n, m: (n, m, 0)),
                pl.BlockSpec((1, 1, Cin), lambda n, m: (n, 0, 0)),
                _const_spec((Cin, Cout), lambda n, m: (0, 0)),
                _const_spec((1, Cout), lambda n, m: (0, 0)),
                _const_spec((1, Cout), lambda n, m: (0, 0))]
    args = [x3, g3, w, scale, bias]
    if residual is None:
        kernel = _proj_gate_kernel
    else:
        kernel = _proj_gate_res_kernel
        in_specs.append(pl.BlockSpec((1, TM, Cout), lambda n, m: (n, m, 0)))
        args.append(residual.reshape(N, HW, Cout))
    out = pl.pallas_call(
        kernel,
        out_shape=jax.ShapeDtypeStruct((N, HW, Cout), jnp.bfloat16),
        grid=grid,
        in_specs=in_specs,
        out_specs=pl.BlockSpec((1, TM, Cout), lambda n, m: (n, m, 0)),
        compiler_params=_cparams(grid),
    )(*args)
    return out.reshape(N, H, W, Cout)


@jax.jit
def head_pool_fc_l2(x, w, b):
    """Fused global avgpool + classifier Linear + F.normalize(p=2, dim=1)."""
    N, H, W, C = x.shape
    E = w.shape[1]
    grid = (1,)
    return pl.pallas_call(
        _head_pool_fc_kernel,
        out_shape=jax.ShapeDtypeStruct((N, E), jnp.float32),
        grid=grid,
        in_specs=[pl.BlockSpec((N, H * W, C), lambda i: (0, 0, 0)),
                  _const_spec((C, E), lambda i: (0, 0)),
                  _const_spec((1, E), lambda i: (0, 0))],
        out_specs=pl.BlockSpec((N, E), lambda i: (0, 0)),
        compiler_params=_cparams(grid),
    )(x.reshape(N, H * W, C), w, b)


# ------------------------------- model forward --------------------------------
def mbconv(x, p):
    h = x
    if "expand_w" in p:                    # skipped when expand_ratio == 1
        h = conv1x1_bn_act(h, p["expand_w"], p["expand_s"], p["expand_b"],
                           act="silu")
    h, mean = depthwise_bn_silu(h, p["dw_w"], p["dw_s"], p["dw_b"],
                                k=p["k"], stride=p["stride"])
    gate = se_gate(mean, p["se_w1"], p["se_b1"], p["se_w2"], p["se_b2"])
    res = x if p["use_res"] else None
    # StochasticDepth is identity at inference; the SE gate and residual add
    # are fused into the projection matmul kernel.
    return conv1x1_gate_proj(h, gate, p["proj_w"], p["proj_s"], p["proj_b"],
                             residual=res)


def efficientnet_b7_forward(params, x_nchw):
    _prime_probes()        # capability probes run eagerly, outside any trace
    x = jnp.transpose(x_nchw, (0, 2, 3, 1)).astype(jnp.bfloat16)  # NCHW->NHWC
    x = stem_conv_bn_silu(x, params["stem_w"], params["stem_s"],
                          params["stem_b"])
    for stage in params["stages"]:
        for blk in stage:
            x = mbconv(x, blk)
    x = conv1x1_bn_act(x, params["head_w"], params["head_s"],
                       params["head_b"], act="silu")
    # classifier: Dropout(0.5) identity at inference, Linear + L2 normalize
    return head_pool_fc_l2(x, params["fc_w"], params["fc_b"])


# --------------------------- deterministic parameters --------------------------
# EfficientNet-B7 stage configs (torchvision, width_mult=2.0 / depth_mult=3.1
# already applied): (expand_ratio, kernel, stride, in_ch, out_ch, num_layers)
B7_STAGES = [
    (1, 3, 1, 64, 32, 4),
    (6, 3, 2, 32, 48, 7),
    (6, 5, 2, 48, 80, 7),
    (6, 3, 2, 80, 160, 10),
    (6, 5, 1, 160, 224, 10),
    (6, 5, 2, 224, 384, 13),
    (6, 3, 1, 384, 640, 4),
]
STEM_CH = 64
HEAD_CH = 2560          # 4 * 640
BN_EPS = 1e-5


def _lane_pad(c):
    """Block-output channels rounded up to the 128-lane vreg width so the big
    early-stage stores are unmasked; pad channels carry exact zeros."""
    return ((c + 127) // 128) * 128


def _fold_bn(rng, c, c_pad=None, gamma_scale=1.0):
    """Synthetic inference-mode BatchNorm folded to (scale, bias); entries for
    lane-pad channels are zero so padded channels stay exactly zero."""
    c_pad = c if c_pad is None else c_pad
    gamma = gamma_scale * (1.0 + 0.05 * rng.standard_normal(c))
    beta = 0.05 * rng.standard_normal(c)
    scale = np.zeros((1, c_pad))
    bias = np.zeros((1, c_pad))
    scale[0, :c] = gamma / np.sqrt(1.0 + BN_EPS)
    bias[0, :c] = beta
    return jnp.asarray(scale, jnp.float32), jnp.asarray(bias, jnp.float32)


def _mat(rng, kin, cout, kin_pad=None, cout_pad=None, dtype=jnp.bfloat16):
    """Conv weight in matmul layout (K, Cout), zero-padded to (kin_pad,
    cout_pad), fan-in scaled."""
    kin_pad = kin if kin_pad is None else kin_pad
    cout_pad = cout if cout_pad is None else cout_pad
    w = np.zeros((kin_pad, cout_pad))
    w[:kin, :cout] = rng.standard_normal((kin, cout)) / np.sqrt(kin)
    return jnp.asarray(w, dtype)


def make_params(seed=0, embedding_dim=128):
    rng = np.random.default_rng(seed)
    params = {}
    stem_cp = _lane_pad(STEM_CH)
    # stem: Conv2d(3, 64, 3, stride=2, padding=1, bias=False) + BN + SiLU
    params["stem_w"] = _mat(rng, 9 * 3, STEM_CH, cout_pad=stem_cp)
    params["stem_s"], params["stem_b"] = _fold_bn(rng, STEM_CH, stem_cp)

    stages = []
    prev_pad = stem_cp
    for expand, k, stride, cin, cout, layers in B7_STAGES:
        cout_pad = _lane_pad(cout)
        blocks = []
        for li in range(layers):
            bin_true = cin if li == 0 else cout
            bin_pad = prev_pad if li == 0 else cout_pad
            bstride = stride if li == 0 else 1
            use_res = (bstride == 1 and bin_true == cout)
            sq = max(1, bin_true // 4)                 # SE squeeze channels
            blk = {"k": k, "stride": bstride, "use_res": use_res}
            if expand != 1:
                cexp = bin_true * expand
                blk["expand_w"] = _mat(rng, bin_true, cexp, kin_pad=bin_pad)
                blk["expand_s"], blk["expand_b"] = _fold_bn(rng, cexp)
                dwc, dwc_pad = cexp, cexp
            else:
                dwc, dwc_pad = bin_true, bin_pad
            dw = np.zeros((k * k, 1, dwc_pad))
            dw[:, :, :dwc] = rng.standard_normal((k * k, 1, dwc)) / k
            blk["dw_w"] = jnp.asarray(dw, jnp.float32)
            blk["dw_s"], blk["dw_b"] = _fold_bn(rng, dwc, dwc_pad)
            w1 = np.zeros((dwc_pad, sq))
            w1[:dwc] = rng.standard_normal((dwc, sq)) / np.sqrt(dwc)
            w2 = np.zeros((sq, dwc_pad))
            w2[:, :dwc] = rng.standard_normal((sq, dwc)) / np.sqrt(sq)
            b2 = np.zeros((1, dwc_pad))
            b2[0, :dwc] = 0.01 * rng.standard_normal(dwc)
            blk["se_w1"] = jnp.asarray(w1, jnp.float32)
            blk["se_b1"] = jnp.asarray(
                0.01 * rng.standard_normal((1, sq)), jnp.float32)
            blk["se_w2"] = jnp.asarray(w2, jnp.float32)
            blk["se_b2"] = jnp.asarray(b2, jnp.float32)
            blk["proj_w"] = _mat(rng, dwc, cout, kin_pad=dwc_pad,
                                 cout_pad=cout_pad)
            # small project-BN gamma on residual blocks keeps the synthetic
            # activations tame through 55 blocks
            blk["proj_s"], blk["proj_b"] = _fold_bn(
                rng, cout, cout_pad, gamma_scale=0.2 if use_res else 1.0)
            blocks.append(blk)
        stages.append(blocks)
        prev_pad = cout_pad
    params["stages"] = stages

    params["head_w"] = _mat(rng, B7_STAGES[-1][4], HEAD_CH, kin_pad=prev_pad)
    params["head_s"], params["head_b"] = _fold_bn(rng, HEAD_CH)

    # classifier Linear(2560, embedding_dim), stored transposed for x @ W^T;
    # kept f32 since it feeds the L2 normalization.
    params["fc_w"] = jnp.asarray(
        rng.standard_normal((HEAD_CH, embedding_dim)) / np.sqrt(HEAD_CH),
        jnp.float32)
    params["fc_b"] = jnp.asarray(
        0.01 * rng.standard_normal((1, embedding_dim)), jnp.float32)
    return params


# ------------------------------------ main -------------------------------------
if __name__ == "__main__":
    # Run capability probes (Buffered(1), strided VMEM reads, CORE_PARALLEL)
    # eagerly, outside any jit trace.
    _prime_probes()

    params = make_params(seed=0)

    # Deterministic input.  B7 nominally runs at 600x600; a 64x64 crop keeps
    # the example small while every stage still has >= 2x2 spatial extent.
    x = jax.random.normal(jax.random.PRNGKey(0), (2, 3, 64, 64), jnp.float32)

    emb = efficientnet_b7_forward(params, x)
    emb = jax.block_until_ready(emb)

    assert emb.shape == (2, 128), emb.shape
    emb_np = np.asarray(emb)
    assert np.all(np.isfinite(emb_np))
    # F.normalize(p=2, dim=1) -> unit-norm rows
    assert np.allclose(np.linalg.norm(emb_np, axis=1), 1.0, atol=1e-3)
    print("KERNEL_OK")
</pallas_src>

<mosaic_0001>
module attributes {stable_mosaic.version = 11 : i64} {
  func.func @k(%arg0: i32, %arg1: memref<8x128xf32, #tpu.memory_space<vmem>>, %arg2: memref<8x128xf32, #tpu.memory_space<vmem>>) attributes {dimension_semantics = [#tpu.dimension_semantics<core_parallel>], iteration_bounds = array<i64: 2>, scalar_prefetch = 0 : i64, scratch_operands = 0 : i64, tpu.core_type = #tpu.core_type<tc>, window_params = [{transform_indices = @transform_0, window_bounds = array<i64: 8, 128>}, {transform_indices = @transform_1, window_bounds = array<i64: 8, 128>}]} {
    %c0 = arith.constant 0 : index
    %c0_0 = arith.constant 0 : index
    %0 = vector.load %arg1[%c0, %c0_0] : memref<8x128xf32, #tpu.memory_space<vmem>>, vector<8x128xf32>
    %cst = arith.constant 2.000000e+00 : f32
    %1 = vector.broadcast %cst : f32 to vector<8x128xf32>
    %2 = arith.mulf %0, %1 : vector<8x128xf32>
    %c0_1 = arith.constant 0 : index
    %c0_2 = arith.constant 0 : index
    %3 = vector.load %arg2[%c0_1, %c0_2] : memref<8x128xf32, #tpu.memory_space<vmem>>, vector<8x128xf32>
    tpu.vector_store %arg2[%c0_1, %c0_2], %2 {strides = array<i32>} : memref<8x128xf32, #tpu.memory_space<vmem>>, vector<8x128xf32>,
    return
  }
  func.func @transform_0(%arg0: i32) -> (i32, i32) {
    %c0_i32 = arith.constant 0 : i32
    %c0_i32_0 = arith.constant 0 : i32
    return %arg0, %c0_i32 : i32, i32
  }
  func.func @transform_1(%arg0: i32) -> (i32, i32) {
    %c0_i32 = arith.constant 0 : i32
    %c0_i32_0 = arith.constant 0 : i32
    return %arg0, %c0_i32 : i32, i32
  }
}

module attributes {stable_mosaic.version = 11 : i64} {
  func.func @k(%arg0: i32, %arg1: memref<8x128xf32, #tpu.memory_space<vmem>>, %arg2: memref<8x128xf32, #tpu.memory_space<vmem>>) attributes {dimension_semantics = [#tpu.dimension_semantics<parallel>], iteration_bounds = array<i64: 1>, scalar_prefetch = 0 : i64, scratch_operands = 0 : i64, tpu.core_type = #tpu.core_type<tc>, window_params = [{pipeline_mode = #tpu.pipeline_mode<synchronous>, transform_indices = @transform_0, window_bounds = array<i64: 8, 128>}, {pipeline_mode = #tpu.pipeline_mode<synchronous>, transform_indices = @transform_1, window_bounds = array<i64: 8, 128>}]} {
    %c0 = arith.constant 0 : index
    %c0_0 = arith.constant 0 : index
    %0 = vector.load %arg1[%c0, %c0_0] : memref<8x128xf32, #tpu.memory_space<vmem>>, vector<8x128xf32>
    %cst = arith.constant 1.000000e+00 : f32
    %1 = vector.broadcast %cst : f32 to vector<8x128xf32>
    %2 = arith.addf %0, %1 : vector<8x128xf32>
    %c0_1 = arith.constant 0 : index
    %c0_2 = arith.constant 0 : index
    %3 = vector.load %arg2[%c0_1, %c0_2] : memref<8x128xf32, #tpu.memory_space<vmem>>, vector<8x128xf32>
    tpu.vector_store %arg2[%c0_1, %c0_2], %2 {strides = array<i32>} : memref<8x128xf32, #tpu.memory_space<vmem>>, vector<8x128xf32>,
    return
  }
  func.func @transform_0(%arg0: i32) -> (i32, i32) {
    %c0_i32 = arith.constant 0 : i32
    %c0_i32_0 = arith.constant 0 : i32
    %c0_i32_1 = arith.constant 0 : i32
    return %c0_i32, %c0_i32_0 : i32, i32
  }
  func.func @transform_1(%arg0: i32) -> (i32, i32) {
    %c0_i32 = arith.constant 0 : i32
    %c0_i32_0 = arith.constant 0 : i32
    %c0_i32_1 = arith.constant 0 : i32
    return %c0_i32, %c0_i32_0 : i32, i32
  }
}

module attributes {stable_mosaic.version = 11 : i64} {
  func.func @k(%arg0: i32, %arg1: memref<1x16x16x128xbf16, #tpu.memory_space<vmem>>, %arg2: memref<1x8x8x128xbf16, #tpu.memory_space<vmem>>, %arg3: memref<20x20x128xf32, #tpu.memory_space<vmem>>) attributes {dimension_semantics = [#tpu.dimension_semantics<parallel>], iteration_bounds = array<i64: 1>, scalar_prefetch = 0 : i64, scratch_operands = 1 : i64, tpu.core_type = #tpu.core_type<tc>, window_params = [{pipeline_mode = #tpu.pipeline_mode<synchronous>, transform_indices = @transform_0, window_bounds = array<i64: 1, 16, 16, 128>}, {pipeline_mode = #tpu.pipeline_mode<synchronous>, transform_indices = @transform_1, window_bounds = array<i64: 1, 8, 8, 128>}]} {
    %cst = arith.constant 0.000000e+00 : f32
    %0 = vector.broadcast %cst : f32 to vector<20x20x128xf32>
    %c0 = arith.constant 0 : index
    %c0_0 = arith.constant 0 : index
    %c0_1 = arith.constant 0 : index
    %1 = vector.load %arg3[%c0, %c0_0, %c0_1] : memref<20x20x128xf32, #tpu.memory_space<vmem>>, vector<20x20x128xf32>
    tpu.vector_store %arg3[%c0, %c0_0, %c0_1], %0 {strides = array<i32>} : memref<20x20x128xf32, #tpu.memory_space<vmem>>, vector<20x20x128xf32>,
    %c0_2 = arith.constant 0 : index
    %c0_3 = arith.constant 0 : index
    %c0_4 = arith.constant 0 : index
    %c0_5 = arith.constant 0 : index
    %2 = vector.load %arg1[%c0_2, %c0_3, %c0_4, %c0_5] : memref<1x16x16x128xbf16, #tpu.memory_space<vmem>>, vector<1x16x16x128xbf16>
    %3 = vector.shape_cast %2 : vector<1x16x16x128xbf16> to vector<16x16x128xbf16>
    %4 = arith.extf %3 : vector<16x16x128xbf16> to vector<16x16x128xf32>
    %c2 = arith.constant 2 : index
    %c2_6 = arith.constant 2 : index
    %c0_7 = arith.constant 0 : index
    %5 = vector.load %arg3[%c2, %c2_6, %c0_7] : memref<20x20x128xf32, #tpu.memory_space<vmem>>, vector<16x16x128xf32>
    tpu.vector_store %arg3[%c2, %c2_6, %c0_7], %4 {strides = array<i32>} : memref<20x20x128xf32, #tpu.memory_space<vmem>>, vector<16x16x128xf32>,
    %c1 = arith.constant 1 : index
    %c1_8 = arith.constant 1 : index
    %c0_9 = arith.constant 0 : index
    %6 = tpu.strided_load %arg3[%c1, %c1_8, %c0_9] {strides = array<i32: 2, 2, 1>} : memref<20x20x128xf32, #tpu.memory_space<vmem>>, vector<8x8x128xf32>
    %7 = arith.truncf %6 : vector<8x8x128xf32> to vector<8x8x128xbf16>
    %c0_10 = arith.constant 0 : index
    %c0_11 = arith.constant 0 : index
    %c0_12 = arith.constant 0 : index
    %c0_13 = arith.constant 0 : index
    %8 = vector.load %arg2[%c0_10, %c0_11, %c0_12, %c0_13] : memref<1x8x8x128xbf16, #tpu.memory_space<vmem>>, vector<1x8x8x128xbf16>
    %9 = vector.shape_cast %8 : vector<1x8x8x128xbf16> to vector<8x8x128xbf16>
    %10 = vector.shape_cast %7 : vector<8x8x128xbf16> to vector<1x8x8x128xbf16>
    tpu.vector_store %arg2[%c0_10, %c0_11, %c0_12, %c0_13], %10 {strides = array<i32>} : memref<1x8x8x128xbf16, #tpu.memory_space<vmem>>, vector<1x8x8x128xbf16>,
    return
  }
  func.func @transform_0(%arg0: i32) -> (i32, i32, i32, i32) {
    %c0_i32 = arith.constant 0 : i32
    %c0_i32_0 = arith.constant 0 : i32
    %c0_i32_1 = arith.constant 0 : i32
    %c0_i32_2 = arith.constant 0 : i32
    %c0_i32_3 = arith.constant 0 : i32
    return %c0_i32, %c0_i32_0, %c0_i32_1, %c0_i32_2 : i32, i32, i32, i32
  }
  func.func @transform_1(%arg0: i32) -> (i32, i32, i32, i32) {
    %c0_i32 = arith.constant 0 : i32
    %c0_i32_0 = arith.constant 0 : i32
    %c0_i32_1 = arith.constant 0 : i32
    %c0_i32_2 = arith.constant 0 : i32
    %c0_i32_3 = arith.constant 0 : i32
    return %c0_i32, %c0_i32_0, %c0_i32_1, %c0_i32_2 : i32, i32, i32, i32
  }
}

module attributes {stable_mosaic.version = 11 : i64} {
  func.func @_mm_bn_kernel(%arg0: i32, %arg1: memref<256x27xbf16, #tpu.memory_space<vmem>>, %arg2: memref<27x128xbf16, #tpu.memory_space<vmem>>, %arg3: memref<1x128xf32, #tpu.memory_space<vmem>>, %arg4: memref<1x128xf32, #tpu.memory_space<vmem>>, %arg5: memref<256x128xbf16, #tpu.memory_space<vmem>>) attributes {dimension_semantics = [#tpu.dimension_semantics<parallel>], iteration_bounds = array<i64: 8>, scalar_prefetch = 0 : i64, scratch_operands = 0 : i64, tpu.core_type = #tpu.core_type<tc>, window_params = [{transform_indices = @transform_0, window_bounds = array<i64: 256, 27>}, {pipeline_mode = #tpu.pipeline_mode<synchronous>, transform_indices = @transform_1, window_bounds = array<i64: 27, 128>}, {pipeline_mode = #tpu.pipeline_mode<synchronous>, transform_indices = @transform_2, window_bounds = array<i64: 1, 128>}, {pipeline_mode = #tpu.pipeline_mode<synchronous>, transform_indices = @transform_3, window_bounds = array<i64: 1, 128>}, {transform_indices = @transform_4, window_bounds = array<i64: 256, 128>}]} {
    %c0 = arith.constant 0 : index
    %c0_0 = arith.constant 0 : index
    %0 = vector.load %arg1[%c0, %c0_0] : memref<256x27xbf16, #tpu.memory_space<vmem>>, vector<256x27xbf16>
    %c0_1 = arith.constant 0 : index
    %c0_2 = arith.constant 0 : index
    %1 = vector.load %arg2[%c0_1, %c0_2] : memref<27x128xbf16, #tpu.memory_space<vmem>>, vector<27x128xbf16>
    %cst = arith.constant dense<0.000000e+00> : vector<256x128xf32>
    %2 = tpu.matmul %0, %1, %cst {dimension_numbers = #tpu.dot_dimension_numbers<[1], [0], [0], [1], [0, 0, 1, 1], [], []>} : vector<256x27xbf16>, vector<27x128xbf16>, vector<256x128xf32> -> vector<256x128xf32>
    %c0_3 = arith.constant 0 : index
    %c0_4 = arith.constant 0 : index
    %3 = vector.load %arg3[%c0_3, %c0_4] : memref<1x128xf32, #tpu.memory_space<vmem>>, vector<1x128xf32>
    %4 = vector.broadcast %3 : vector<1x128xf32> to vector<256x128xf32>
    %5 = arith.mulf %2, %4 : vector<256x128xf32>
    %c0_5 = arith.constant 0 : index
    %c0_6 = arith.constant 0 : index
    %6 = vector.load %arg4[%c0_5, %c0_6] : memref<1x128xf32, #tpu.memory_space<vmem>>, vector<1x128xf32>
    %7 = vector.broadcast %6 : vector<1x128xf32> to vector<256x128xf32>
    %8 = arith.addf %5, %7 : vector<256x128xf32>
    %9 = arith.negf %8 : vector<256x128xf32>
    %10 = math.exp %9 : vector<256x128xf32>
    %cst_7 = arith.constant 1.000000e+00 : f32
    %11 = vector.broadcast %cst_7 : f32 to vector<256x128xf32>
    %12 = arith.addf %11, %10 : vector<256x128xf32>
    %13 = arith.divf %11, %12 : vector<256x128xf32>
    %14 = arith.mulf %8, %13 : vector<256x128xf32>
    %15 = arith.truncf %14 : vector<256x128xf32> to vector<256x128xbf16>
    %c0_8 = arith.constant 0 : index
    %c0_9 = arith.constant 0 : index
    %16 = vector.load %arg5[%c0_8, %c0_9] : memref<256x128xbf16, #tpu.memory_space<vmem>>, vector<256x128xbf16>
    tpu.vector_store %arg5[%c0_8, %c0_9], %15 {strides = array<i32>} : memref<256x128xbf16, #tpu.memory_space<vmem>>, vector<256x128xbf16>,
    return
  }
  func.func @transform_0(%arg0: i32) -> (i32, i32) {
    %c0_i32 = arith.constant 0 : i32
    %c0_i32_0 = arith.constant 0 : i32
    return %arg0, %c0_i32 : i32, i32
  }
  func.func @transform_1(%arg0: i32) -> (i32, i32) {
    %c0_i32 = arith.constant 0 : i32
    %c0_i32_0 = arith.constant 0 : i32
    %c0_i32_1 = arith.constant 0 : i32
    return %c0_i32, %c0_i32_0 : i32, i32
  }
  func.func @transform_2(%arg0: i32) -> (i32, i32) {
    %c0_i32 = arith.constant 0 : i32
    %c0_i32_0 = arith.constant 0 : i32
    %c0_i32_1 = arith.constant 0 : i32
    return %c0_i32, %c0_i32_0 : i32, i32
  }
  func.func @transform_3(%arg0: i32) -> (i32, i32) {
    %c0_i32 = arith.constant 0 : i32
    %c0_i32_0 = arith.constant 0 : i32
    %c0_i32_1 = arith.constant 0 : i32
    return %c0_i32, %c0_i32_0 : i32, i32
  }
  func.func @transform_4(%arg0: i32) -> (i32, i32) {
    %c0_i32 = arith.constant 0 : i32
    %c0_i32_0 = arith.constant 0 : i32
    return %arg0, %c0_i32 : i32, i32
  }
}

</mosaic_0001>

<bundles_post_ra>
// kernel: tpu_custom_call.1
= control target key start
LH: loop header
LB: loop body
LE: loop exit
PB: predicated region body
PF: predicated region fallthrough
CT: control target
= control target key end

     0   :  { %6 = vsyncpa [#allocation3], 0  ;;  %s115_s0 = inlined_call_operand.hbm [shape: f32[8,128], index: 0, kind: input, shape index: {}]   ;;  %s116_s1 = inlined_call_operand.hbm [shape: f32[8,128], index: 1, kind: output, shape index: {}]  }
   0x1   :  { %7 = vsyncpa [#allocation4], 0  ;;  %s13_s8 = sshll.u32 %s115_s0, 4  ;;  %s97_s9 = smov [#allocation2]   ;;  %s14_s8 = int_to_ptr.hbm [resolvable:$true] %s13_s8 }
   0x2   :  { %s15_s10 = sshll.u32 %s97_s9, 4  ;;  %s16_s10 = int_to_ptr.vmem [resolvable:$true] %s15_s10 }
   0x3   :  { %18 = dma.hbm_to_vmem [thread:$0]  %s14_s8, 128, %s16_s10, [#allocation3]  }
   0x4   :  { %93 = dma.done.wait [#allocation3], 128  }
   0x5   :  { %94 = vsyncadd [#allocation3], 4294967168  ;;  %s98_s11 = smov [#allocation5]   ;;  %s33_s15 = sshll.u32 %s116_s1, 4  ;;  %v23_v0 = vld [vmem:[#allocation2] sm:$0xff]  ;;  %s34_s15 = int_to_ptr.hbm [resolvable:$true] %s33_s15 }
   0x6   :  { %s31_s12 = sshll.u32 %s98_s11, 4  ;;  %v24_v1 = vadd.f32 1.0, %v23_v0  ;;  %s32_s12 = int_to_ptr.vmem [resolvable:$true] %s31_s12 }
   0x8   :  { %25 = vst [vmem:[#allocation5] sm:$0xff] %v24_v1 }
   0x9   :  { %36 = dma.vmem_to_hbm [thread:$0]  %s32_s12, 128, %s34_s15, [#allocation4]  }
   0xa   :  { %95 = dma.done.wait [#allocation4], 128  }
   0xb   :  { %96 = vsyncadd [#allocation4], 4294967168 }
   0xc   :  { %41 = vsyncpa [#allocation3], 1 }
   0xd   :  { %42 = vsyncpa [#allocation4], 1 }

// kernel: tpu_custom_call.1
= control target key start
LH: loop header
LB: loop body
LE: loop exit
PB: predicated region body
PF: predicated region fallthrough
CT: control target
= control target key end

     0   :  { %6 = vsyncpa [#allocation4], 0  ;;  %s428_s0 = inlined_call_operand.hbm [shape: bf16[1,16,16,128], index: 0, kind: input, shape index: {}]   ;;  %s429_s1 = inlined_call_operand.hbm [shape: bf16[1,8,8,128], index: 1, kind: output, shape index: {}]  }
   0x1   :  { %7 = vsyncpa [#allocation5], 0  ;;  %s12_s8 = sshll.u32 %s428_s0, 4  ;;  %s401_s9 = smov [#allocation3]   ;;  %s13_s8 = int_to_ptr.hbm [resolvable:$true] %s12_s8 }
   0x2   :  { %s14_s10 = sshll.u32 %s401_s9, 4  ;;  %s402_s11 = smov 64   ;;  %s15_s10 = int_to_ptr.vmem [resolvable:$true] %s14_s10 }
   0x3   :  { %s403_s12 = smov 4  }
   0x4   :  { %20 = dma.hbm_to_vmem [thread:$0]  %s13_s8, 2048, %s15_s10, [#allocation4], %s402_s11, %s402_s11, %s403_s12  }
   0x5   :  { %397 = dma.done.wait [#allocation4], 2048  }
   0x6   :  { %398 = vsyncadd [#allocation4], 4294965248  ;;  %v404_v0 = vmov 0.0   ;;  %v326_v1 = vld [vmem:[#allocation3 + $0x8] sm:$0xff]   ;;  %v328_v2 = vld [vmem:[#allocation3 + $0x18] sm:$0xff]   ;;  %s405_s0 = smov [#allocation6]  }
   0x7   :  { %34 = vst [vmem:[#allocation2 + $0x48] sm:$0xff] %v404_v0  ;;  %v248_v3 = vunpack.c.l.bf16 %v326_v1  ;;  %v249_v4 = vunpack.c.h.bf16 %v326_v1  ;;  %v330_v5 = vld [vmem:[#allocation3 + $0x28] sm:$0xff]   ;;  %v256_v6 = vunpack.c.l.bf16 %v328_v2  ;;  %v257_v7 = vunpack.c.h.bf16 %v328_v2  ;;  %v332_v8 = vld [vmem:[#allocation3 + $0x38] sm:$0xff]   ;;  %s219_s13 = sshll.u32 %s405_s0, 4  ;;  %s221_s16 = sshll.u32 %s429_s1, 4  ;;  %s220_s13 = int_to_ptr.vmem [resolvable:$true] %s219_s13  ;;  %s222_s16 = int_to_ptr.hbm [resolvable:$true] %s221_s16 }
   0x8   :  { %28 = vst [vmem:[#allocation2 + $0x18] sm:$0xff] %v404_v0  ;;  %v264_v9 = vunpack.c.l.bf16 %v330_v5  ;;  %v265_v10 = vunpack.c.h.bf16 %v330_v5  ;;  %v334_v11 = vld [vmem:[#allocation3 + $0x48] sm:$0xff]   ;;  %v272_v12 = vunpack.c.l.bf16 %v332_v8  ;;  %v273_v13 = vunpack.c.h.bf16 %v332_v8  ;;  %v336_v14 = vld [vmem:[#allocation3 + $0x58] sm:$0xff]  }
   0x9   :  { %29 = vst [vmem:[#allocation2 + $0x20] sm:$0xff] %v404_v0  ;;  %v280_v15 = vunpack.c.l.bf16 %v334_v11  ;;  %v281_v16 = vunpack.c.h.bf16 %v334_v11  ;;  %v338_v17 = vld [vmem:[#allocation3 + $0x68] sm:$0xff]   ;;  %v288_v18 = vunpack.c.l.bf16 %v336_v14  ;;  %v289_v19 = vunpack.c.h.bf16 %v336_v14 }
   0xa   :  { %35 = vst [vmem:[#allocation2 + $0x50] sm:$0xff] %v404_v0  ;;  %v296_v21 = vunpack.c.l.bf16 %v338_v17  ;;  %v297_v23 = vunpack.c.h.bf16 %v338_v17 }
   0xb   :  { %40 = vst [vmem:[#allocation2 + $0x78] sm:$0xff] %v404_v0 }
   0xc   :  { %41 = vst [vmem:[#allocation2 + $0x80] sm:$0xff] %v404_v0 }
   0xd   :  { %46 = vst [vmem:[#allocation2 + $0xa8] sm:$0xff] %v404_v0 }
   0xe   :  { %47 = vst [vmem:[#allocation2 + $0xb0] sm:$0xff] %v404_v0 }
   0xf   :  { %52 = vst [vmem:[#allocation2 + $0xd8] sm:$0xff] %v404_v0 }
  0x10   :  { %53 = vst [vmem:[#allocation2 + $0xe0] sm:$0xff] %v404_v0  ;;  %v184_v20 = vld [vmem:[#allocation2 + $0x19] ss:$2 sm:$0xff] }
  0x11   :  { %58 = vst [vmem:[#allocation2 + $0x108] sm:$0xff] %v404_v0 }
  0x12   :  { %59 = vst [vmem:[#allocation2 + $0x110] sm:$0xff] %v404_v0 }
  0x13   :  { %64 = vst [vmem:[#allocation2 + $0x138] sm:$0xff] %v404_v0 }
  0x14   :  { %65 = vst [vmem:[#allocation2 + $0x140] sm:$0xff] %v404_v0 }
  0x15   :  { %70 = vst [vmem:[#allocation2 + $0x168] sm:$0xff] %v404_v0 }
  0x16   :  { %71 = vst [vmem:[#allocation2 + $0x170] sm:$0xff] %v404_v0 }
  0x17   :  { %152 = vst [vmem:[#allocation2 + $0x4a] sm:$0xff] %v248_v3 }
  0x18   :  { %153 = vst [vmem:[#allocation2 + $0x52] sm:$0xff] %v249_v4 }
  0x19   :  { %156 = vst [vmem:[#allocation2 + $0x7a] sm:$0xff] %v256_v6 }
  0x1a   :  { %157 = vst [vmem:[#allocation2 + $0x82] sm:$0xff] %v257_v7 }
  0x1b   :  { %160 = vst [vmem:[#allocation2 + $0xaa] sm:$0xff] %v264_v9 }
  0x1c   :  { %161 = vst [vmem:[#allocation2 + $0xb2] sm:$0xff] %v265_v10 }
  0x1d   :  { %164 = vst [vmem:[#allocation2 + $0xda] sm:$0xff] %v272_v12 }
  0x1e   :  { %165 = vst [vmem:[#allocation2 + $0xe2] sm:$0xff] %v273_v13 }
  0x1f   :  { %168 = vst [vmem:[#allocation2 + $0x10a] sm:$0xff] %v280_v15  ;;  %v186_v22 = vld [vmem:[#allocation2 + $0x49] ss:$2 sm:$0xff] }
  0x20   :  { %169 = vst [vmem:[#allocation2 + $0x112] sm:$0xff] %v281_v16  ;;  %v309_v24 = vpack.c.bf16 %v186_v22, %v184_v20 }
  0x21   :  { %172 = vst [vmem:[#allocation2 + $0x13a] sm:$0xff] %v288_v18  ;;  %v188_v25 = vld [vmem:[#allocation2 + $0x79] ss:$2 sm:$0xff] }
  0x22   :  { %173 = vst [vmem:[#allocation2 + $0x142] sm:$0xff] %v289_v19 }
  0x23   :  { %176 = vst [vmem:[#allocation2 + $0x16a] sm:$0xff] %v296_v21  ;;  %v190_v26 = vld [vmem:[#allocation2 + $0xa9] ss:$2 sm:$0xff] }
  0x24   :  { %177 = vst [vmem:[#allocation2 + $0x172] sm:$0xff] %v297_v23  ;;  %v314_v27 = vpack.c.bf16 %v190_v26, %v188_v25 }
  0x25   :  { %310 = vst [vmem:[#allocation6] sm:$0xff] %v309_v24   ;;  %v192_v28 = vld [vmem:[#allocation2 + $0xd9] ss:$2 sm:$0xff] }
  0x26   :  { %341 = vst [vmem:[#allocation6 + $0x8] sm:$0xff] %v314_v27  }
  0x27   :  { %v194_v29 = vld [vmem:[#allocation2 + $0x109] ss:$2 sm:$0xff] }
  0x28   :  { %v319_v30 = vpack.c.bf16 %v194_v29, %v192_v28 }
  0x29   :  { %v196_v31 = vld [vmem:[#allocation2 + $0x139] ss:$2 sm:$0xff] }
  0x2a   :  { %342 = vst [vmem:[#allocation6 + $0x10] sm:$0xff] %v319_v30  }
  0x2b   :  { %v198_v32 = vld [vmem:[#allocation2 + $0x169] ss:$2 sm:$0xff] }
  0x2c   :  { %v324_v33 = vpack.c.bf16 %v198_v32, %v196_v31 }
  0x2e   :  { %343 = vst [vmem:[#allocation6 + $0x18] sm:$0xff] %v324_v33  }
  0x2f   :  { %227 = dma.vmem_to_hbm [thread:$0]  %s220_s13, 512, %s222_s16, [#allocation5], %s402_s11, %s402_s11, %s403_s12  }
  0x30   :  { %399 = dma.done.wait [#allocation5], 512  }
  0x31   :  { %400 = vsyncadd [#allocation5], 4294966784 }
  0x32   :  { %232 = vsyncpa [#allocation4], 1 }
  0x33   :  { %233 = vsyncpa [#allocation5], 1 }

// kernel: stem_conv_bn_silu.1
= control target key start
LH: loop header
LB: loop body
LE: loop exit
PB: predicated region body
PF: predicated region fallthrough
CT: control target
= control target key end

     0   :  { %9 = vsyncpa [#allocation3], 0  ;;  %s2891_s0 = inlined_call_operand.vmem [shape: bf16[2048,27], index: 0, kind: input, shape index: {}]   ;;  %s2892_s1 = inlined_call_operand.vmem [shape: bf16[27,128], index: 1, kind: input, shape index: {}]   ;;  %s2893_s2 = inlined_call_operand.vmem [shape: f32[1,128], index: 2, kind: input, shape index: {}]   ;;  %s2894_s3 = inlined_call_operand.vmem [shape: f32[1,128], index: 3, kind: input, shape index: {}]   ;;  %s2895_s4 = inlined_call_operand.hbm [shape: bf16[2048,128], index: 4, kind: output, shape index: {}]  }
   0x1   :  { %11 = vsyncpa [#allocation3 + $0x1], 0  ;;  %s1844_s15 = smov 0   ;;  %s1846_s16 = smov 0  }
   0x2   :  { %s1848_s17 = smov 0   ;;  %s1850_s18 = smov 0  }
   0x3 LB: > { %s1865_s19 = sadd.s32 4294967295, %s1814_s18   ;;  %s1326_s20 = sadd.s32 4294967294, %s1814_s18   ;;  %s1814_s18 = sphi %s1850_s18, %s2981_s18   ;;  %s1810_s17 = sphi %s1848_s17, %s2980_s17   ;;  %s1806_s16 = sphi %s1846_s16, %s2979_s16   ;;  %s1802_s15 = sphi %s1844_s15, %s2978_s15  }
   0x4   : > { %s1869_s21 = sadd.s32 1, %s1814_s18   ;;  %s113_s22 = sadd.s32 1, %s1810_s17 }
   0x5   : > { %s110_s23 = ssub.s32 %s1814_s18, %s1869_s21  ;;  %p123_p0 = scmp.ne.s32.totalorder %s1810_s17, %s1806_s16 }
   0x6   : > { %p111_p1 = scmp.eq.s32.totalorder %s110_s23, 0  ;;  %p124_p2 = scmp.eq.s32.totalorder %s1865_s19, 7 }
   0x7   : > { %p129_p3 = scmp.ne.s32.totalorder %s1806_s16, %s1802_s15  ;;  %p130_p4 = scmp.eq.s32.totalorder %s1326_s20, 7 }
   0x8   : > { %s1880_s24 = scalar_select %p111_p1, %s1810_s17, %s113_s22  }
   0x9   : > { %p1882_p5 = por %p124_p2, %p123_p0  ;;  %p1886_p6 = por %p130_p4, %p129_p3 }
   0xa   : > { %p1329_p7 = scmp.ge.s32.totalorder %s1814_s18, 1  ;;  %p166_p8 = scmp.lt.s32.totalorder %s1814_s18, 9 }
   0xc   : > { %p167_p9 = pnand %p1329_p7, %p166_p8 }
   0xd   : > { %s1331_s5 = sshll.u32 (!%p167_p9), %s1865_s19, 5  ;;  %s189_s22 = sand.u32 (!%p167_p9), 1, %s1806_s16  }
   0xe   : > { %170 = sbr.rel (%p167_p9) target bundleno = 332 (0x14c), region = 36  ;;  %p193_p10 = scmp.lt.s32.totalorder (!%p167_p9), %s1331_s5, 255 }
   0xf   : > { %s2143_s23 = sshll.u32 (!%p167_p9), %s189_s22, 7  ;;  %s1476_s6 = sshll.u32 (!%p167_p9), %s1865_s19, 7 }
  0x10   : > { %s2185_s27 = scalar_lea.vmem (!%p167_p9), [#allocation2], %s2143_s23  ;;  %s1772_s23 = scalar_lea.hbm (!%p167_p9), %s2895_s4, 1024 }
  0x11   : > { %s1261_s9 = sshll.u32 (!%p167_p9), %s2185_s27, 4  ;;  %s1262_s9 = int_to_ptr.vmem [resolvable:$true] %s1261_s9 }
  0x13   : > { %v1403_v0 = vld [vmem:[%s2892_s1 + $0x8] sm:$0xf]  ;;  %v1475_v1 = vld [vmem:[%s2892_s1 + $0x8] sm:$0x30]  ;;  %vm376_vm0 = vcmask 1044480   ;;  %vm377_vm1 = vcmask 1045504  }
  0x14   : > { %v1404_v2 = vor.u32 %v1475_v1, %v1403_v0  ;;  %v1816_v3 = vmov 65535   ;;  %s2983_s5 = smov (!%p193_p10, %s1331_s5), 255  ;;  %v1474_v7 = vld [vmem:[%s2892_s1] sm:$0xff]  ;;  %vm327_vm2 = vcmask 220160  }
  0x15   : > { %v378_v4 = vsel %vm376_vm0, 4294967295, %v1816_v3  ;;  %s1332_s8 = sshll.u32 %s2983_s5, 2  ;;  %v1942_v24 = vld [vmem:[%s2893_s2] ss:$0 sm:$0xff] }
  0x16   : > { %v379_v5 = vsel %vm377_vm1, %v378_v4, 0  ;;  %s1905_s11 = scalar_lea.vmem %s2891_s0, %s1332_s8  ;;  %v1947_v25 = vld [vmem:[%s2894_s3] ss:$0 sm:$0xff]  ;;  %s1260_s8 = scalar_lea.hbm %s2895_s4, %s1476_s6 }
  0x17   : > { %v381_v6 = vand.u32 %v1404_v2, %v379_v5  ;;  %v1458_v8 = vld [vmem:[%s1905_s11] sm:$0xff]  ;;  %v1459_v12 = vld [vmem:[%s1905_s11 + $0x8] sm:$0xff]  ;;  %v1460_v16 = vld [vmem:[%s1905_s11 + $0x10] sm:$0xff]  ;;  %s1263_s10 = sshll.u32 %s1260_s8, 4  ;;  %s1264_s10 = int_to_ptr.hbm [resolvable:$true] %s1263_s10 }
  0x18   : > { %v1462_v9 = vld [vmem:[%s1905_s11 + $0x20] sm:$0xff]  ;;  %v1463_v13 = vld [vmem:[%s1905_s11 + $0x28] sm:$0xff]  ;;  %v1464_v17 = vld [vmem:[%s1905_s11 + $0x30] sm:$0xff]  ;;  %s1766_s12 = sshra.s32 %s1264_s10, 4  ;;  %s1767_s12 = int_to_ptr.hbm [resolvable:$true] %s1766_s12 }
  0x19   : > { %389 = vmatpush.bf16.msra.mxu0 %v381_v6  ;;  %1572 = vmatpush.bf16.msra.mxu1 %v381_v6  ;;  %v1466_v10 = vld [vmem:[%s1905_s11 + $0x40] sm:$0xff]  ;;  %v1467_v14 = vld [vmem:[%s1905_s11 + $0x48] sm:$0xff]  ;;  %v1468_v18 = vld [vmem:[%s1905_s11 + $0x50] sm:$0xff]  ;;  %s1768_s13 = scalar_lea.hbm %s1767_s12, 128  ;;  %p1773_p0 = scmp.lt.s32.totalorder %s1767_s12, %s2895_s4 }
  0x1a   : > { %1573 = vmatpush.bf16.msra.mxu2 %v381_v6  ;;  %1574 = vmatpush.bf16.msra.mxu3 %v381_v6  ;;  %v1470_v11 = vld [vmem:[%s1905_s11 + $0x60] sm:$0xff]  ;;  %v1471_v15 = vld [vmem:[%s1905_s11 + $0x68] sm:$0xff]  ;;  %v1472_v19 = vld [vmem:[%s1905_s11 + $0x70] sm:$0xff]  ;;  %p1769_p11 = scmp.ne.s32.totalorder %s1767_s12, %s1768_s13  ;;  %p1774_p1 = scmp.lt.s32.totalorder %s1772_s23, %s1768_s13 }
  0x1b   : > { %v1461_v20 = vld [vmem:[%s1905_s11 + $0x18] sm:$0xff] }
  0x1c   : > { %v1465_v21 = vld [vmem:[%s1905_s11 + $0x38] sm:$0xff]  ;;  %p1770_p12 = pnand %p1769_p11, %p1882_p5  ;;  %p1775_p2 = por %p1774_p1, %p1773_p0 }
  0x1d   : > { %390 = vmatpush.bf16.msra.mxu0 %v1474_v7  ;;  %1575 = vmatpush.bf16.msra.mxu1 %v1474_v7  ;;  %v1469_v22 = vld [vmem:[%s1905_s11 + $0x58] sm:$0xff] }
  0x1e   : > { %1576 = vmatpush.bf16.msra.mxu2 %v1474_v7  ;;  %1577 = vmatpush.bf16.msra.mxu3 %v1474_v7  ;;  %v1473_v23 = vld [vmem:[%s1905_s11 + $0x78] sm:$0xff]  ;;  %s1249_s11 = scalar_lea.sflag [#allocation3], %s189_s22  ;;  %p1771_p13 = pneg %p1770_p12 }
  0x20   : > { %1405 = vmatmul.msk.bf16.vlgmr.msra.gmra.mxu0 %vm327_vm2, %v1458_v8  ;;  %1409 = vmatmul.msk.bf16.vlgmr.msra.gmra.mxu1 %vm327_vm2, %v1462_v9  ;;  %p1776_p3 = pnand %p1775_p2, %p1771_p13 }
  0x21   : > { %1413 = vmatmul.msk.bf16.vlgmr.msra.gmra.mxu2 %vm327_vm2, %v1466_v10  ;;  %1417 = vmatmul.msk.bf16.vlgmr.msra.gmra.mxu3 %vm327_vm2, %v1470_v11 }
  0x30   : > { %1406 = vmatmul.msk.bf16.gmra.mxu0 %vm327_vm2, %v1459_v12  ;;  %1410 = vmatmul.msk.bf16.gmra.mxu1 %vm327_vm2, %v1463_v13 }
  0x31   : > { %1414 = vmatmul.msk.bf16.gmra.mxu2 %vm327_vm2, %v1467_v14  ;;  %1418 = vmatmul.msk.bf16.gmra.mxu3 %vm327_vm2, %v1471_v15 }
  0x40   : > { %1407 = vmatmul.msk.bf16.gmra.mxu0 %vm327_vm2, %v1460_v16  ;;  %1411 = vmatmul.msk.bf16.gmra.mxu1 %vm327_vm2, %v1464_v17 }
  0x41   : > { %1415 = vmatmul.msk.bf16.gmra.mxu2 %vm327_vm2, %v1468_v18  ;;  %1419 = vmatmul.msk.bf16.gmra.mxu3 %vm327_vm2, %v1472_v19 }
  0x50   : > { %1408 = vmatmul.msk.bf16.gmra.mxu0 %vm327_vm2, %v1461_v20  ;;  %1412 = vmatmul.msk.bf16.gmra.mxu1 %vm327_vm2, %v1465_v21 }
  0x51   : > { %1416 = vmatmul.msk.bf16.gmra.mxu2 %vm327_vm2, %v1469_v22  ;;  %1420 = vmatmul.msk.bf16.gmra.mxu3 %vm327_vm2, %v1473_v23 }
  0x9d   : > { %v392_v26 = vpop.f32.mrf.mxu0  ;;  %v412_v27 = vpop.f32.mrf.mxu1 }
  0x9e   : > { %v476_v28 = vmul.f32 %v1942_v24, %v392_v26  ;;  %v484_v29 = vmul.f32 %v1942_v24, %v412_v27 }
  0xa0   : > { %v1952_v30 = vadd.f32 %v1947_v25, %v476_v28  ;;  %v1955_v31 = vadd.f32 %v1947_v25, %v484_v29 }
  0xa2   : > { %v1421_v32 = vmul.f32 -1.442695, %v1952_v30  ;;  %v1429_v33 = vmul.f32 -1.442695, %v1955_v31 }
  0xa4   : > { %1622 = vpow2.f32 %v1421_v32  ;;  %v432_v34 = vpop.f32.mrf.mxu2  ;;  %v452_v35 = vpop.f32.mrf.mxu3 }
  0xa5   : > { %1624 = vpow2.f32 %v1429_v33  ;;  %v492_v36 = vmul.f32 %v1942_v24, %v432_v34  ;;  %v500_v37 = vmul.f32 %v1942_v24, %v452_v35  ;;  %v394_v38 = vpop.f32.mrf.mxu0  ;;  %v414_v39 = vpop.f32.mrf.mxu1 }
  0xa6   : > { %v477_v40 = vmul.f32 %v1942_v24, %v394_v38  ;;  %v485_v41 = vmul.f32 %v1942_v24, %v414_v39 }
  0xa7   : > { %v1964_v42 = vadd.f32 %v1947_v25, %v492_v36  ;;  %v1967_v43 = vadd.f32 %v1947_v25, %v500_v37 }
  0xa8   : > { %v1970_v44 = vadd.f32 %v1947_v25, %v477_v40  ;;  %v1973_v45 = vadd.f32 %v1947_v25, %v485_v41 }
  0xa9   : > { %v1437_v46 = vmul.f32 -1.442695, %v1964_v42  ;;  %v1445_v47 = vmul.f32 -1.442695, %v1967_v43 }
  0xaa   : > { %v1623_v48 = vpop.eup %1622  ;;  %v1422_v51 = vmul.f32 -1.442695, %v1970_v44  ;;  %v1430_v53 = vmul.f32 -1.442695, %v1973_v45 }
  0xab   : > { %v1625_v49 = vpop.eup %1624  ;;  %v1977_v50 = vadd.f32 1.0, %v1623_v48  ;;  %1626 = vpow2.f32 %v1437_v46 }
  0xac   : > { %v1980_v52 = vadd.f32 1.0, %v1625_v49  ;;  %1628 = vpow2.f32 %v1445_v47  ;;  %v434_v54 = vpop.f32.mrf.mxu2  ;;  %v454_v58 = vpop.f32.mrf.mxu3 }
  0xad   : > { %1630 = vrcp.f32 %v1977_v50  ;;  %v493_v55 = vmul.f32 %v1942_v24, %v434_v54  ;;  %v683_v62 = vand.u32 2147483648, %v1977_v50  ;;  %v681_v2 = vand.u32 2147483647, %v1977_v50  ;;  %v397_v4 = vpop.f32.mrf.mxu0  ;;  %v417_v5 = vpop.f32.mrf.mxu1 }
  0xae   : > { %1632 = vrcp.f32 %v1980_v52  ;;  %v501_v3 = vmul.f32 %v1942_v24, %v454_v58  ;;  %vm677_vm3 = vweird.f32 %v1977_v50  ;;  %v803_v8 = vand.u32 2147483648, %v1980_v52 }
  0xaf   : > { %1634 = vpow2.f32 %v1422_v51  ;;  %v1987_v57 = vadd.f32 %v1947_v25, %v493_v55  ;;  %vm797_vm4 = vweird.f32 %v1980_v52  ;;  %v801_v12 = vand.u32 2147483647, %v1980_v52 }
  0xb0   : > { %1636 = vpow2.f32 %v1430_v53  ;;  %v684_v13 = vor.u32 1.1754944e-38, %v683_v62  ;;  %v478_v15 = vmul.f32 %v1942_v24, %v397_v4  ;;  %v486_v16 = vmul.f32 %v1942_v24, %v417_v5 }
  0xb1   : > { %v1627_v56 = vpop.eup %1626  ;;  %v1438_v9 = vmul.f32 -1.442695, %v1987_v57  ;;  %vm2014_vm5 = vcmp.eq.f32.partialorder %v681_v2, 8.507059e+37  ;;  %v2023_v21 = vadd.f32 %v1947_v25, %v501_v3  ;;  %v804_v23 = vor.u32 1.1754944e-38, %v803_v8 }
  0xb2   : > { %v1629_v59 = vpop.eup %1628  ;;  %v1989_v60 = vadd.f32 1.0, %v1627_v56  ;;  %vm2030_vm7 = vcmp.eq.f32.partialorder %v801_v12, 8.507059e+37  ;;  %v2041_v35 = vadd.f32 %v1947_v25, %v478_v15  ;;  %v2044_v36 = vadd.f32 %v1947_v25, %v486_v16 }
  0xb3   : > { %v1991_v61 = vpop.eup %1630  ;;  %v1994_v63 = vadd.f32 1.0, %v1629_v59  ;;  %v1446_v39 = vmul.f32 -1.442695, %v2023_v21 }
  0xb4   : > { %v1996_v0 = vpop.eup %1632  ;;  %v673_v1 = vmul.f32 %v1991_v61, %v1977_v50  ;;  %1638 = vrcp.f32 %v1989_v60  ;;  %vm678_vm6 = vweird.f32 %v1991_v61  ;;  %v923_v29 = vand.u32 2147483648, %v1989_v60 }
  0xb5   : > { %v1635_v6 = vpop.eup %1634  ;;  %v793_v7 = vmul.f32 %v1996_v0, %v1980_v52  ;;  %1640 = vrcp.f32 %v1994_v63  ;;  %v1043_v32 = vand.u32 2147483648, %v1994_v63  ;;  %v921_v34 = vand.u32 2147483647, %v1989_v60  ;;  %vm2056_vm9 = vmor %vm677_vm3, %vm678_vm6  ;;  %v399_v40 = vpop.f32.mrf.mxu0 }
  0xb6   : > { %v1637_v10 = vpop.eup %1636  ;;  %v674_v11 = vsub.f32 1.0, %v673_v1  ;;  %v2018_v19 = vadd.f32 1.0, %v1635_v6  ;;  %1642 = vpow2.f32 %v1438_v9  ;;  %vm798_vm8 = vweird.f32 %v1996_v0 }
  0xb7   : > { %v794_v14 = vsub.f32 1.0, %v793_v7  ;;  %v2020_v20 = vadd.f32 1.0, %v1637_v10  ;;  %vm917_vm10 = vweird.f32 %v1989_v60  ;;  %v924_v49 = vor.u32 1.1754944e-38, %v923_v29  ;;  %vm2072_vm11 = vmor %vm797_vm4, %vm798_vm8 }
  0xb8   : > { %v675_v17 = vmul.f32 %v1991_v61, %v674_v11  ;;  %1644 = vrcp.f32 %v2018_v19  ;;  %v696_v47 = vand.u32 2147483647, %v2018_v19  ;;  %v1041_v51 = vand.u32 2147483647, %v1994_v63  ;;  %v437_v11 = vpop.f32.mrf.mxu2 }
  0xb9   : > { %v795_v22 = vmul.f32 %v1996_v0, %v794_v14  ;;  %1646 = vrcp.f32 %v2020_v20  ;;  %v2068_v50 = vor.u32 1.1754944e-38, %v1043_v32  ;;  %vm2078_vm13 = vcmp.eq.f32.partialorder %v921_v34, 8.507059e+37 }
  0xba   : > { %v2027_v26 = vpop.eup %1638  ;;  %v676_v27 = vadd.f32 %v1991_v61, %v675_v17  ;;  %vm692_vm14 = vweird.f32 %v2018_v19  ;;  %v698_v58 = vand.u32 2147483648, %v2018_v19  ;;  %1648 = vpow2.f32 %v1446_v39 }
  0xbb   : > { %v913_v33 = vmul.f32 %v2027_v26, %v1989_v60  ;;  %v2046_v37 = vpop.eup %1640  ;;  %v796_v38 = vadd.f32 %v1996_v0, %v795_v22  ;;  %vm918_vm12 = vweird.f32 %v2027_v26  ;;  %vm2093_vm15 = vcmp.eq.f32.partialorder %v696_v47, 8.507059e+37 }
  0xbc   : > { %v1033_v46 = vmul.f32 %v2046_v37, %v1994_v63  ;;  %v680_v48 = vsel %vm2056_vm9, %v1991_v61, %v676_v27  ;;  %v1643_v53 = vpop.eup %1642  ;;  %vm1037_vm0 = vweird.f32 %v1994_v63  ;;  %v818_v6 = vand.u32 2147483648, %v2020_v20  ;;  %vm2111_vm2 = vmor %vm917_vm10, %vm918_vm12 }
  0xbd   : > { %v914_v41 = vsub.f32 1.0, %v913_v33  ;;  %v800_v52 = vsel %vm2072_vm11, %v1996_v0, %v796_v38  ;;  %v2087_v62 = vadd.f32 1.0, %v1643_v53  ;;  %v685_v1 = vsel %vm2014_vm5, %v684_v13, %v680_v48 }
  0xbe   : > { %v1645_v59 = vpop.eup %1644  ;;  %v1034_v61 = vsub.f32 1.0, %v1033_v46  ;;  %v816_v0 = vand.u32 2147483647, %v2020_v20  ;;  %v1423_v7 = vmul.f32 -1.442695, %v2041_v35  ;;  %v805_v8 = vsel %vm2030_vm7, %v804_v23, %v800_v52 }
  0xbf   : > { %v915_v55 = vmul.f32 %v2027_v26, %v914_v41  ;;  %v688_v3 = vmul.f32 %v1645_v59, %v2018_v19  ;;  %v1647_v5 = vpop.eup %1646  ;;  %1650 = vrcp.f32 %v2087_v62  ;;  %vm812_vm1 = vweird.f32 %v2020_v20 }
  0xc0   : > { %v808_v10 = vmul.f32 %v1647_v5, %v2020_v20  ;;  %v1152_v12 = vmul.f32 %v685_v1, %v1952_v30  ;;  %v1035_v14 = vmul.f32 %v2046_v37, %v1034_v61  ;;  %vm1038_vm3 = vweird.f32 %v2046_v37  ;;  %v1649_v18 = vpop.eup %1648 }
  0xc1   : > { %v916_v2 = vadd.f32 %v2027_v26, %v915_v55  ;;  %v689_v9 = vsub.f32 1.0, %v688_v3  ;;  %v699_v15 = vor.u32 1.1754944e-38, %v698_v58  ;;  %vm693_vm4 = vweird.f32 %v1645_v59  ;;  %vm2159_vm11 = vmor %vm1037_vm0, %vm1038_vm3  ;;  %v439_v3 = vpop.f32.mrf.mxu2 }
  0xc2   : > { %v809_v30 = vsub.f32 1.0, %v808_v10  ;;  %v1160_v22 = vmul.f32 %v805_v8, %v1955_v31  ;;  %vm2121_vm5 = vcmp.eq.f32.partialorder %v1041_v51, 8.507059e+37  ;;  %vm2126_vm6 = vcmp.eq.f32.partialorder %v816_v0, 8.507059e+37  ;;  %v457_v31 = vpop.f32.mrf.mxu3  ;;  %vm694_vm9 = vmor %vm692_vm14, %vm693_vm4 }
  0xc3   : > { %v920_v16 = vsel %vm2111_vm2, %v2027_v26, %v916_v2  ;;  %v690_v17 = vmul.f32 %v1645_v59, %v689_v9  ;;  %v819_v27 = vor.u32 1.1754944e-38, %v818_v6  ;;  %1652 = vpow2.f32 %v1423_v7  ;;  %v419_v2 = vpop.f32.mrf.mxu1 }
  0xc4   : > { %v810_v26 = vmul.f32 %v1647_v5, %v809_v30  ;;  %vm813_vm7 = vweird.f32 %v1647_v5  ;;  %vm932_vm8 = vweird.f32 %v2087_v62  ;;  %v2131_v29 = vadd.f32 1.0, %v1649_v18 }
  0xc5   : > { %v691_v28 = vadd.f32 %v1645_v59, %v690_v17  ;;  %v1651_v32 = vpop.eup %1650  ;;  %v925_v33 = vsel %vm2078_vm13, %v924_v49, %v920_v16  ;;  %v1036_v34 = vadd.f32 %v2046_v37, %v1035_v14  ;;  %v1431_v38 = vmul.f32 -1.442695, %v2044_v36  ;;  %vm814_vm10 = vmor %vm812_vm1, %vm813_vm7 }
  0xc6   : > { %v494_v39 = vmul.f32 %v1942_v24, %v437_v11  ;;  %v811_v46 = vadd.f32 %v1647_v5, %v810_v26  ;;  %v928_v47 = vmul.f32 %v1651_v32, %v2087_v62  ;;  %v936_v48 = vand.u32 2147483647, %v2087_v62 }
  0xc7   : > { %v695_v41 = vsel %vm694_vm9, %v1645_v59, %v691_v28  ;;  %v938_v19 = vand.u32 2147483648, %v2087_v62  ;;  %1654 = vrcp.f32 %v2131_v29  ;;  %v502_v51 = vmul.f32 %v1942_v24, %v457_v31 }
  0xc8   : > { %v700_v49 = vsel %vm2093_vm15, %v699_v15, %v695_v41  ;;  %v815_v55 = vsel %vm814_vm10, %v1647_v5, %v811_v46  ;;  %v929_v56 = vsub.f32 1.0, %v928_v47  ;;  %v479_v20 = vmul.f32 %v1942_v24, %v399_v40 }
  0xc9   : > { %v1153_v54 = vmul.f32 %v700_v49, %v1970_v44  ;;  %v1653_v58 = vpop.eup %1652  ;;  %v1040_v59 = vsel %vm2159_vm11, %v2046_v37, %v1036_v34  ;;  %v820_v52 = vsel %vm2126_vm6, %v819_v27, %v815_v55  ;;  %1656 = vpow2.f32 %v1431_v38 }
  0xca   : > { %v2171_v63 = vadd.f32 %v1947_v25, %v494_v39  ;;  %v1161_v44 = vmul.f32 %v820_v52, %v1973_v45  ;;  %v930_v1 = vmul.f32 %v1651_v32, %v929_v56  ;;  %vm933_vm12 = vweird.f32 %v1651_v32  ;;  %v459_v17 = vpop.f32.mrf.mxu3 }
  0xcb   : > { %v1480_v61 = vpack.c.bf16 %v1153_v54, %v1152_v12  ;;  %v1168_v4 = vmul.f32 %v925_v33, %v1964_v42  ;;  %v2175_v5 = vadd.f32 1.0, %v1653_v58  ;;  %v2179_v0 = vadd.f32 %v1947_v25, %v502_v51  ;;  %vm934_vm13 = vmor %vm932_vm8, %vm933_vm12 }
  0xcc   : > { %v1439_v37 = vmul.f32 -1.442695, %v2171_v63  ;;  %v1045_v6 = vsel %vm2121_vm5, %v2068_v50, %v1040_v59  ;;  %v1500_v45 = vpack.c.bf16 %v1161_v44, %v1160_v22  ;;  %v931_v7 = vadd.f32 %v1651_v32, %v930_v1 }
  0xcd   : > { %1481 = vst [vmem:[%s2185_s27] sm:$0xff] %v1480_v61   ;;  %v2189_v42 = vadd.f32 %v1947_v25, %v479_v20  ;;  %v1655_v8 = vpop.eup %1654  ;;  %v939_v9 = vor.u32 1.1754944e-38, %v938_v19  ;;  %1658 = vrcp.f32 %v2175_v5  ;;  %v487_v10 = vmul.f32 %v1942_v24, %v419_v2 }
  0xce   : > { %v495_v50 = vmul.f32 %v1942_v24, %v439_v3  ;;  %1560 = vst [vmem:[%s2185_s27 + $0x20] sm:$0xff] %v1500_v45   ;;  %v935_v11 = vsel %vm934_vm13, %v1651_v32, %v931_v7  ;;  %vm937_vm14 = vcmp.eq.f32.partialorder %v936_v48, 8.507059e+37  ;;  %v1048_v12 = vmul.f32 %v1655_v8, %v2131_v29 }
  0xcf   : > { %1660 = vpow2.f32 %v1439_v37  ;;  %v1657_v13 = vpop.eup %1656  ;;  %v940_v14 = vsel %vm937_vm14, %v939_v9, %v935_v11  ;;  %v1056_v15 = vand.u32 2147483647, %v2131_v29  ;;  %v1058_v62 = vand.u32 2147483648, %v2131_v29 }
  0xd0   : > { %v1447_v16 = vmul.f32 -1.442695, %v2179_v0  ;;  %v1169_v30 = vmul.f32 %v940_v14, %v1987_v57  ;;  %v1049_v18 = vsub.f32 1.0, %v1048_v12  ;;  %v2202_v22 = vadd.f32 1.0, %v1657_v13 }
  0xd1   : > { %v1424_v60 = vmul.f32 -1.442695, %v2189_v42  ;;  %vm1053_vm15 = vweird.f32 %v1655_v8  ;;  %v2206_v23 = vadd.f32 %v1947_v25, %v487_v10  ;;  %v2209_v27 = vadd.f32 %v1947_v25, %v495_v50 }
  0xd2   : > { %1662 = vpow2.f32 %v1447_v16  ;;  %v1520_v28 = vpack.c.bf16 %v1169_v30, %v1168_v4  ;;  %v1050_v26 = vmul.f32 %v1655_v8, %v1049_v18  ;;  %v503_v57 = vmul.f32 %v1942_v24, %v459_v17 }
  0xd3   : > { %1664 = vrcp.f32 %v2202_v22  ;;  %v2213_v31 = vpop.eup %1658  ;;  %v1432_v32 = vmul.f32 -1.442695, %v2206_v23  ;;  %v1176_v34 = vmul.f32 %v1045_v6, %v1967_v43  ;;  %vm1052_vm0 = vweird.f32 %v2131_v29 }
  0xd4   : > { %1666 = vpow2.f32 %v1424_v60  ;;  %1564 = vst [vmem:[%s2185_s27 + $0x40] sm:$0xff] %v1520_v28   ;;  %v1051_v38 = vadd.f32 %v1655_v8, %v1050_v26  ;;  %v703_v39 = vmul.f32 %v2213_v31, %v2175_v5  ;;  %vm1054_vm1 = vmor %vm1052_vm0, %vm1053_vm15  ;;  %v1059_v40 = vor.u32 1.1754944e-38, %v1058_v62 }
  0xd5   : > { %v1661_v33 = vpop.eup %1660  ;;  %1668 = vpow2.f32 %v1432_v32  ;;  %v1440_v46 = vmul.f32 -1.442695, %v2209_v27  ;;  %vm1057_vm2 = vcmp.eq.f32.partialorder %v1056_v15, 8.507059e+37  ;;  %v2226_v43 = vadd.f32 %v1947_v25, %v503_v57 }
  0xd6   : > { %v2222_v41 = vadd.f32 1.0, %v1661_v33  ;;  %v1055_v47 = vsel %vm1054_vm1, %v1655_v8, %v1051_v38  ;;  %v704_v48 = vsub.f32 1.0, %v703_v39  ;;  %vm707_vm3 = vweird.f32 %v2175_v5 }
  0xd7   : > { %v1060_v19 = vsel %vm1057_vm2, %v1059_v40, %v1055_v47  ;;  %v711_v29 = vand.u32 2147483647, %v2175_v5  ;;  %v713_v55 = vand.u32 2147483648, %v2175_v5  ;;  %v831_v59 = vand.u32 2147483647, %v2202_v22 }
  0xd8   : > { %v1663_v49 = vpop.eup %1662  ;;  %1670 = vrcp.f32 %v2222_v41  ;;  %v1177_v53 = vmul.f32 %v1060_v19, %v2023_v21  ;;  %v705_v54 = vmul.f32 %v2213_v31, %v704_v48  ;;  %v1448_v52 = vmul.f32 -1.442695, %v2226_v43 }
  0xd9   : > { %v2231_v51 = vpop.eup %1664  ;;  %v2236_v56 = vadd.f32 1.0, %v1663_v49  ;;  %1672 = vpow2.f32 %v1440_v46  ;;  %vm708_vm4 = vweird.f32 %v2213_v31  ;;  %vm2245_vm5 = vcmp.eq.f32.partialorder %v711_v29, 8.507059e+37 }
  0xda   : > { %v1667_v20 = vpop.eup %1666  ;;  %v823_v58 = vmul.f32 %v2231_v51, %v2202_v22  ;;  %v1540_v61 = vpack.c.bf16 %v1177_v53, %v1176_v34  ;;  %v706_v44 = vadd.f32 %v2213_v31, %v705_v54  ;;  %v833_v3 = vand.u32 2147483648, %v2202_v22  ;;  %vm2259_vm6 = vmor %vm707_vm3, %vm708_vm4  ;;  %v402_v53 = vpop.f32.mrf.mxu0 }
  0xdb   : > { %1674 = vrcp.f32 %v2236_v56  ;;  %v1669_v21 = vpop.eup %1668  ;;  %v951_v4 = vand.u32 2147483647, %v2222_v41  ;;  %v953_v37 = vand.u32 2147483648, %v2222_v41  ;;  %v2253_v6 = vadd.f32 1.0, %v1667_v20  ;;  %v422_v54 = vpop.f32.mrf.mxu1 }
  0xdc   : > { %v824_v2 = vsub.f32 1.0, %v823_v58  ;;  %1568 = vst [vmem:[%s2185_s27 + $0x60] sm:$0xff] %v1540_v61   ;;  %v2255_v45 = vadd.f32 1.0, %v1669_v21  ;;  %1676 = vpow2.f32 %v1448_v52  ;;  %v714_v9 = vor.u32 1.1754944e-38, %v713_v55 }
  0xdd   : > { %vm827_vm7 = vweird.f32 %v2202_v22  ;;  %vm2265_vm8 = vcmp.eq.f32.partialorder %v831_v59, 8.507059e+37  ;;  %v710_v11 = vsel %vm2259_vm6, %v2213_v31, %v706_v44  ;;  %vm828_vm9 = vweird.f32 %v2231_v51  ;;  %v442_v59 = vpop.f32.mrf.mxu2 }
  0xde   : > { %v1671_v7 = vpop.eup %1670  ;;  %v825_v10 = vmul.f32 %v2231_v51, %v824_v2  ;;  %1678 = vrcp.f32 %v2253_v6  ;;  %v834_v14 = vor.u32 1.1754944e-38, %v833_v3  ;;  %vm947_vm10 = vweird.f32 %v2222_v41  ;;  %vm2289_vm12 = vmor %vm827_vm7, %vm828_vm9 }
  0xdf   : > { %v943_v5 = vmul.f32 %v1671_v7, %v2222_v41  ;;  %v1673_v12 = vpop.eup %1672  ;;  %v1073_v15 = vand.u32 2147483648, %v2236_v56  ;;  %vm2280_vm11 = vcmp.eq.f32.partialorder %v951_v4, 8.507059e+37  ;;  %v954_v30 = vor.u32 1.1754944e-38, %v953_v37 }
  0xe0   : > { %v826_v13 = vadd.f32 %v2231_v51, %v825_v10  ;;  %1680 = vrcp.f32 %v2255_v45  ;;  %v715_v18 = vsel %vm2245_vm5, %v714_v9, %v710_v11  ;;  %vm1067_vm13 = vweird.f32 %v2236_v56 }
  0xe1   : > { %v2278_v62 = vpop.eup %1674  ;;  %v944_v16 = vsub.f32 1.0, %v943_v5  ;;  %v1071_v26 = vand.u32 2147483647, %v2236_v56  ;;  %v726_v57 = vand.u32 2147483647, %v2253_v6  ;;  %vm948_vm14 = vweird.f32 %v1671_v7 }
  0xe2   : > { %v1063_v28 = vmul.f32 %v2278_v62, %v2236_v56  ;;  %v1677_v31 = vpop.eup %1676  ;;  %v830_v32 = vsel %vm2289_vm12, %v2231_v51, %v826_v13  ;;  %v728_v22 = vand.u32 2147483648, %v2253_v6  ;;  %v2302_v38 = vor.u32 1.1754944e-38, %v1073_v15  ;;  %vm949_vm1 = vmor %vm947_vm10, %vm948_vm14 }
  0xe3   : > { %v945_v33 = vmul.f32 %v1671_v7, %v944_v16  ;;  %v846_v39 = vand.u32 2147483647, %v2255_v45  ;;  %v2305_v40 = vadd.f32 1.0, %v1673_v12  ;;  %v2308_v47 = vmul.f32 %v715_v18, %v2041_v35 }
  0xe4   : > { %v1064_v34 = vsub.f32 1.0, %v1063_v28  ;;  %v1679_v46 = vpop.eup %1678  ;;  %vm1068_vm15 = vweird.f32 %v2278_v62  ;;  %vm722_vm0 = vweird.f32 %v2253_v6  ;;  %v835_v49 = vsel %vm2265_vm8, %v834_v14, %v830_v32  ;;  %v462_v28 = vpop.f32.mrf.mxu3 }
  0xe5   : > { %v946_v48 = vadd.f32 %v1671_v7, %v945_v33  ;;  %v718_v29 = vmul.f32 %v1679_v46, %v2253_v6  ;;  %vm2318_vm2 = vcmp.eq.f32.partialorder %v726_v57, 8.507059e+37  ;;  %vm842_vm3 = vweird.f32 %v2255_v45  ;;  %vm2350_vm6 = vmor %vm1067_vm13, %vm1068_vm15 }
  0xe6   : > { %v1065_v19 = vmul.f32 %v2278_v62, %v1064_v34  ;;  %v2323_v35 = vadd.f32 1.0, %v1677_v31  ;;  %v1681_v55 = vpop.eup %1680  ;;  %v729_v58 = vor.u32 1.1754944e-38, %v728_v22  ;;  %v848_v41 = vand.u32 2147483648, %v2255_v45 }
  0xe7   : > { %v950_v20 = vsel %vm949_vm1, %v1671_v7, %v946_v48  ;;  %1682 = vrcp.f32 %v2305_v40  ;;  %v719_v44 = vsub.f32 1.0, %v718_v29  ;;  %v838_v21 = vmul.f32 %v1681_v55, %v2255_v45 }
  0xe8   : > { %v955_v52 = vsel %vm2280_vm11, %v954_v30, %v950_v20  ;;  %v2330_v61 = vadd.f32 %v2278_v62, %v1065_v19  ;;  %vm2333_vm4 = vcmp.eq.f32.partialorder %v846_v39, 8.507059e+37  ;;  %vm723_vm5 = vweird.f32 %v1679_v46  ;;  %v444_v19 = vpop.f32.mrf.mxu2 }
  0xe9   : > { %v968_v2 = vand.u32 2147483648, %v2305_v40  ;;  %v480_v3 = vmul.f32 %v1942_v24, %v402_v53  ;;  %v488_v4 = vmul.f32 %v1942_v24, %v422_v54  ;;  %v720_v37 = vmul.f32 %v1679_v46, %v719_v44  ;;  %vm724_vm10 = vmor %vm722_vm0, %vm723_vm5 }
  0xea   : > { %v839_v7 = vsub.f32 1.0, %v838_v21  ;;  %v966_v8 = vand.u32 2147483647, %v2305_v40  ;;  %1684 = vrcp.f32 %v2323_v35  ;;  %v1162_v9 = vmul.f32 %v835_v49, %v2044_v36  ;;  %v424_v49 = vpop.f32.mrf.mxu1 }
  0xeb   : > { %v2344_v10 = vmul.f32 %v955_v52, %v2171_v63  ;;  %vm843_vm7 = vweird.f32 %v1681_v55  ;;  %v849_v11 = vor.u32 1.1754944e-38, %v848_v41  ;;  %v1070_v5 = vsel %vm2350_vm6, %v2278_v62, %v2330_v61 }
  0xec   : > { %v721_v12 = vadd.f32 %v1679_v46, %v720_v37  ;;  %v840_v36 = vmul.f32 %v1681_v55, %v839_v7  ;;  %vm962_vm8 = vweird.f32 %v2305_v40  ;;  %v969_v63 = vor.u32 1.1754944e-38, %v968_v2  ;;  %vm844_vm12 = vmor %vm842_vm3, %vm843_vm7  ;;  %v464_v50 = vpop.f32.mrf.mxu3 }
  0xed   : > { %v1683_v13 = vpop.eup %1682  ;;  %vm2359_vm9 = vcmp.eq.f32.partialorder %v1071_v26, 8.507059e+37  ;;  %v1086_v56 = vand.u32 2147483647, %v2323_v35  ;;  %v2368_v15 = vadd.f32 %v1947_v25, %v480_v3  ;;  %v2371_v62 = vadd.f32 %v1947_v25, %v488_v4 }
  0xee   : > { %v496_v16 = vmul.f32 %v1942_v24, %v442_v59  ;;  %v725_v17 = vsel %vm724_vm10, %v1679_v46, %v721_v12  ;;  %v841_v30 = vadd.f32 %v1681_v55, %v840_v36  ;;  %v958_v18 = vmul.f32 %v1683_v13, %v2305_v40  ;;  %v404_v46 = vpop.f32.mrf.mxu0 }
  0xef   : > { %vm2375_vm11 = vcmp.eq.f32.partialorder %v966_v8, 8.507059e+37  ;;  %v1088_v6 = vand.u32 2147483648, %v2323_v35  ;;  %v730_v26 = vsel %vm2318_vm2, %v729_v58, %v725_v17  ;;  %vm963_vm13 = vweird.f32 %v1683_v13 }
  0xf0   : > { %v1425_v57 = vmul.f32 -1.442695, %v2368_v15  ;;  %v1433_v31 = vmul.f32 -1.442695, %v2371_v62  ;;  %v1685_v32 = vpop.eup %1684  ;;  %v1155_v33 = vmul.f32 %v730_v26, %v2189_v42  ;;  %v845_v22 = vsel %vm844_vm12, %v1681_v55, %v841_v30  ;;  %vm964_vm15 = vmor %vm962_vm8, %vm963_vm13 }
  0xf1   : > { %v959_v34 = vsub.f32 1.0, %v958_v18  ;;  %v2389_v39 = vadd.f32 %v1947_v25, %v496_v16  ;;  %v850_v48 = vsel %vm2333_vm4, %v849_v11, %v845_v22  ;;  %v1078_v45 = vmul.f32 %v1685_v32, %v2323_v35 }
  0xf2   : > { %vm1083_vm14 = vweird.f32 %v1685_v32  ;;  %1686 = vpow2.f32 %v1425_v57  ;;  %v1485_v29 = vpack.c.bf16 %v1155_v33, %v2308_v47  ;;  %v1163_v42 = vmul.f32 %v850_v48, %v2206_v23 }
  0xf3   : > { %v960_v51 = vmul.f32 %v1683_v13, %v959_v34  ;;  %1688 = vpow2.f32 %v1433_v31  ;;  %v1079_v53 = vsub.f32 1.0, %v1078_v45  ;;  %v1441_v54 = vmul.f32 -1.442695, %v2389_v39 }
  0xf4   : > { %v504_v55 = vmul.f32 %v1942_v24, %v462_v28  ;;  %v481_v20 = vmul.f32 %v1942_v24, %v404_v46  ;;  %1557 = vst [vmem:[%s2185_s27 + $0x8] sm:$0xff] %v1485_v29   ;;  %v1505_v58 = vpack.c.bf16 %v1163_v42, %v1162_v9  ;;  %v489_v59 = vmul.f32 %v1942_v24, %v424_v49 }
  0xf5   : > { %v961_v41 = vadd.f32 %v1683_v13, %v960_v51  ;;  %v497_v52 = vmul.f32 %v1942_v24, %v444_v19  ;;  %v1080_v23 = vmul.f32 %v1685_v32, %v1079_v53  ;;  %1690 = vpow2.f32 %v1441_v54  ;;  %v427_v19 = vpop.f32.mrf.mxu1 }
  0xf6   : > { %v2406_v47 = vadd.f32 %v1947_v25, %v504_v55  ;;  %v2409_v61 = vadd.f32 %v1947_v25, %v481_v20  ;;  %v1075_v44 = vsel %vm2359_vm9, %v2302_v38, %v1070_v5  ;;  %1561 = vst [vmem:[%s2185_s27 + $0x28] sm:$0xff] %v1505_v58   ;;  %vm1082_vm0 = vweird.f32 %v2323_v35  ;;  %v407_v22 = vpop.f32.mrf.mxu0 }
  0xf7   : > { %v965_v21 = vsel %vm964_vm15, %v1683_v13, %v961_v41  ;;  %vm2416_vm1 = vcmp.eq.f32.partialorder %v1086_v56, 8.507059e+37  ;;  %v1081_v3 = vadd.f32 %v1685_v32, %v1080_v23  ;;  %v2424_v37 = vadd.f32 %v1947_v25, %v489_v59  ;;  %vm1084_vm2 = vmor %vm1082_vm0, %vm1083_vm14 }
  0xf8   : > { %v1687_v40 = vpop.eup %1686  ;;  %v970_v2 = vsel %vm2375_vm11, %v969_v63, %v965_v21  ;;  %v1449_v4 = vmul.f32 -1.442695, %v2406_v47  ;;  %v1089_v35 = vor.u32 1.1754944e-38, %v1088_v6  ;;  %v2431_v9 = vadd.f32 %v1947_v25, %v497_v52 }
  0xf9   : > { %v1689_v7 = vpop.eup %1688  ;;  %v1171_v38 = vmul.f32 %v970_v2, %v2209_v27  ;;  %v2428_v8 = vadd.f32 1.0, %v1687_v40  ;;  %v1085_v11 = vsel %vm1084_vm2, %v1685_v32, %v1081_v3  ;;  %v1426_v12 = vmul.f32 -1.442695, %v2409_v61  ;;  %v2616_v2 = vld [vmem:[%s2893_s2] ss:$0 sm:$0xff] }
  0xfa   : > { %v2433_v5 = vadd.f32 1.0, %v1689_v7  ;;  %1692 = vpow2.f32 %v1449_v4  ;;  %v1178_v36 = vmul.f32 %v1075_v44, %v2179_v0  ;;  %v1090_v63 = vsel %vm2416_vm1, %v1089_v35, %v1085_v11 }
  0xfb   : > { %v1525_v27 = vpack.c.bf16 %v1171_v38, %v2344_v10  ;;  %1694 = vrcp.f32 %v2428_v8  ;;  %v1691_v13 = vpop.eup %1690  ;;  %v1179_v14 = vmul.f32 %v1090_v63, %v2226_v43  ;;  %v1434_v56 = vmul.f32 -1.442695, %v2424_v37 }
  0xfc   : > { %1696 = vrcp.f32 %v2433_v5  ;;  %v505_v16 = vmul.f32 %v1942_v24, %v464_v50  ;;  %v2446_v17 = vadd.f32 1.0, %v1691_v13  ;;  %v1442_v10 = vmul.f32 -1.442695, %v2431_v9 }
  0xfd   : > { %1565 = vst [vmem:[%s2185_s27 + $0x48] sm:$0xff] %v1525_v27   ;;  %v1545_v0 = vpack.c.bf16 %v1179_v14, %v1178_v36  ;;  %1698 = vpow2.f32 %v1426_v12  ;;  %v743_v18 = vand.u32 2147483648, %v2428_v8  ;;  %v863_v6 = vand.u32 2147483648, %v2433_v5 }
  0xfe   : > { %1700 = vrcp.f32 %v2446_v17  ;;  %v2453_v43 = vadd.f32 %v1947_v25, %v505_v16  ;;  %vm737_vm3 = vweird.f32 %v2428_v8  ;;  %v741_v31 = vand.u32 2147483647, %v2428_v8 }
  0xff   : > { %1569 = vst [vmem:[%s2185_s27 + $0x68] sm:$0xff] %v1545_v0   ;;  %1702 = vpow2.f32 %v1434_v56  ;;  %vm857_vm4 = vweird.f32 %v2433_v5  ;;  %v861_v33 = vand.u32 2147483647, %v2433_v5  ;;  %v744_v48 = vor.u32 1.1754944e-38, %v743_v18 }
 0x100   : > { %v1693_v30 = vpop.eup %1692  ;;  %1704 = vpow2.f32 %v1442_v10  ;;  %v981_v45 = vand.u32 2147483647, %v2446_v17  ;;  %v1450_v49 = vmul.f32 -1.442695, %v2453_v43  ;;  %v864_v51 = vor.u32 1.1754944e-38, %v863_v6 }
 0x101   : > { %v2455_v60 = vpop.eup %1694  ;;  %v2458_v28 = vadd.f32 1.0, %v1693_v30  ;;  %vm977_vm5 = vweird.f32 %v2446_v17  ;;  %vm2477_vm6 = vcmp.eq.f32.partialorder %v741_v31, 8.507059e+37  ;;  %v983_v41 = vand.u32 2147483648, %v2446_v17 }
 0x102   : > { %v2460_v26 = vpop.eup %1696  ;;  %v733_v57 = vmul.f32 %v2455_v60, %v2428_v8  ;;  %v482_v59 = vmul.f32 %v1942_v24, %v407_v22  ;;  %vm738_vm7 = vweird.f32 %v2455_v60  ;;  %vm2486_vm8 = vcmp.eq.f32.partialorder %v861_v33, 8.507059e+37  ;;  %v2629_v8 = vld [vmem:[%s2894_s3] ss:$0 sm:$0xff] }
 0x103   : > { %v853_v32 = vmul.f32 %v2460_v26, %v2433_v5  ;;  %1706 = vrcp.f32 %v2458_v28  ;;  %v1699_v34 = vpop.eup %1698  ;;  %v490_v44 = vmul.f32 %v1942_v24, %v427_v19  ;;  %vm2493_vm9 = vcmp.eq.f32.partialorder %v981_v45, 8.507059e+37  ;;  %vm2513_vm12 = vmor %vm737_vm3, %vm738_vm7 }
 0x104   : > { %v734_v46 = vsub.f32 1.0, %v733_v57  ;;  %v1701_v29 = vpop.eup %1700  ;;  %v2474_v53 = vadd.f32 1.0, %v1699_v34  ;;  %vm858_vm10 = vweird.f32 %v2460_v26  ;;  %v1103_v7 = vand.u32 2147483648, %v2458_v28 }
 0x105   : > { %v854_v42 = vsub.f32 1.0, %v853_v32  ;;  %v1703_v54 = vpop.eup %1702  ;;  %v973_v58 = vmul.f32 %v1701_v29, %v2446_v17  ;;  %vm978_vm11 = vweird.f32 %v1701_v29  ;;  %v2507_v50 = vadd.f32 %v1947_v25, %v482_v59  ;;  %vm2528_vm13 = vmor %vm857_vm4, %vm858_vm10 }
 0x106   : > { %v735_v55 = vmul.f32 %v2455_v60, %v734_v46  ;;  %1708 = vrcp.f32 %v2474_v53  ;;  %v1705_v21 = vpop.eup %1704  ;;  %v2502_v38 = vadd.f32 1.0, %v1703_v54  ;;  %v984_v12 = vor.u32 1.1754944e-38, %v983_v41  ;;  %vm2539_vm14 = vmor %vm977_vm5, %vm978_vm11  ;;  %v447_v41 = vpop.f32.mrf.mxu2 }
 0x107   : > { %v855_v52 = vmul.f32 %v2460_v26, %v854_v42  ;;  %v974_v40 = vsub.f32 1.0, %v973_v58  ;;  %1710 = vpow2.f32 %v1450_v49  ;;  %v1101_v36 = vand.u32 2147483647, %v2458_v28 }
 0x108   : > { %v736_v1 = vadd.f32 %v2455_v60, %v735_v55  ;;  %v2518_v27 = vadd.f32 1.0, %v1705_v21  ;;  %v2521_v63 = vadd.f32 %v1947_v25, %v490_v44  ;;  %v756_v16 = vand.u32 2147483647, %v2474_v53 }
 0x109   : > { %v2497_v3 = vpop.eup %1706  ;;  %v856_v4 = vadd.f32 %v2460_v26, %v855_v52  ;;  %v975_v24 = vmul.f32 %v1701_v29, %v974_v40  ;;  %vm1097_vm15 = vweird.f32 %v2458_v28  ;;  %v2544_v5 = vor.u32 1.1754944e-38, %v1103_v7 }
 0x10a   : > { %v1093_v35 = vmul.f32 %v2497_v3, %v2458_v28  ;;  %v740_v13 = vsel %vm2513_vm12, %v2455_v60, %v736_v1  ;;  %v758_v30 = vand.u32 2147483648, %v2474_v53  ;;  %1712 = vrcp.f32 %v2502_v38 }
 0x10b   : > { %v976_v14 = vadd.f32 %v1701_v29, %v975_v24  ;;  %v860_v25 = vsel %vm2528_vm13, %v2460_v26, %v856_v4  ;;  %vm752_vm0 = vweird.f32 %v2474_v53  ;;  %v1427_v17 = vmul.f32 -1.442695, %v2507_v50 }
 0x10c   : > { %v1094_v56 = vsub.f32 1.0, %v1093_v35  ;;  %v1709_v0 = vpop.eup %1708  ;;  %v745_v26 = vsel %vm2477_vm6, %v744_v48, %v740_v13  ;;  %vm1098_vm1 = vweird.f32 %v2497_v3  ;;  %1714 = vrcp.f32 %v2518_v27 }
 0x10d   : > { %v1711_v18 = vpop.eup %1710  ;;  %v980_v60 = vsel %vm2539_vm14, %v1701_v29, %v976_v14  ;;  %v748_v6 = vmul.f32 %v1709_v0, %v2474_v53  ;;  %v865_v31 = vsel %vm2486_vm8, %v864_v51, %v860_v25  ;;  %vm2560_vm2 = vcmp.eq.f32.partialorder %v756_v16, 8.507059e+37  ;;  %vm2597_vm8 = vmor %vm1097_vm15, %vm1098_vm1  ;;  %v409_v25 = vpop.f32.mrf.mxu0 }
 0x10e   : > { %v1095_v57 = vmul.f32 %v2497_v3, %v1094_v56  ;;  %v876_v22 = vand.u32 2147483647, %v2502_v38  ;;  %v985_v34 = vsel %vm2493_vm9, %v984_v12, %v980_v60  ;;  %vm753_vm3 = vweird.f32 %v1709_v0  ;;  %v467_v12 = vpop.f32.mrf.mxu3 }
 0x10f   : > { %v749_v32 = vsub.f32 1.0, %v748_v6  ;;  %v759_v46 = vor.u32 1.1754944e-38, %v758_v30  ;;  %v2567_v48 = vadd.f32 1.0, %v1711_v18  ;;  %v878_v49 = vand.u32 2147483648, %v2502_v38  ;;  %vm754_vm6 = vmor %vm752_vm0, %vm753_vm3 }
 0x110   : > { %1716 = vpow2.f32 %v1427_v17  ;;  %v1435_v19 = vmul.f32 -1.442695, %v2521_v63  ;;  %v1713_v29 = vpop.eup %1712  ;;  %v1156_v42 = vmul.f32 %v745_v26, %v2368_v15  ;;  %v2573_v51 = vmul.f32 %v865_v31, %v2371_v62 }
 0x111   : > { %v750_v45 = vmul.f32 %v1709_v0, %v749_v32  ;;  %v2576_v54 = vadd.f32 %v2497_v3, %v1095_v57  ;;  %1718 = vrcp.f32 %v2567_v48  ;;  %v868_v20 = vmul.f32 %v1713_v29, %v2502_v38 }
 0x112   : > { %vm872_vm4 = vweird.f32 %v2502_v38  ;;  %vm2581_vm5 = vcmp.eq.f32.partialorder %v876_v22, 8.507059e+37  ;;  %v1715_v59 = vpop.eup %1714  ;;  %v2586_v15 = vmul.f32 %v985_v34, %v2389_v39  ;;  %vm992_vm7 = vweird.f32 %v2518_v27  ;;  %v429_v22 = vpop.f32.mrf.mxu1 }
 0x113   : > { %v751_v55 = vadd.f32 %v1709_v0, %v750_v45  ;;  %v996_v62 = vand.u32 2147483647, %v2518_v27  ;;  %1720 = vpow2.f32 %v1435_v19  ;;  %vm2601_vm9 = vcmp.eq.f32.partialorder %v1101_v36, 8.507059e+37 }
 0x114   : > { %v869_v53 = vsub.f32 1.0, %v868_v20  ;;  %v879_v44 = vor.u32 1.1754944e-38, %v878_v49  ;;  %v988_v21 = vmul.f32 %v1715_v59, %v2518_v27  ;;  %v1100_v1 = vsel %vm2597_vm8, %v2497_v3, %v2576_v54  ;;  %v449_v20 = vpop.f32.mrf.mxu2 }
 0x115   : > { %v755_v23 = vsel %vm754_vm6, %v1709_v0, %v751_v55  ;;  %v998_v40 = vand.u32 2147483648, %v2518_v27  ;;  %v498_v4 = vmul.f32 %v2616_v2, %v447_v41  ;;  %vm873_vm10 = vweird.f32 %v1713_v29 }
 0x116   : > { %v760_v28 = vsel %vm2560_vm2, %v759_v46, %v755_v23  ;;  %v1717_v7 = vpop.eup %1716  ;;  %v870_v35 = vmul.f32 %v1713_v29, %v869_v53  ;;  %v989_v11 = vsub.f32 1.0, %v988_v21  ;;  %vm993_vm11 = vweird.f32 %v1715_v59  ;;  %vm874_vm13 = vmor %vm872_vm4, %vm873_vm10  ;;  %v469_v41 = vpop.f32.mrf.mxu3 }
 0x117   : > { %v1157_v24 = vmul.f32 %v760_v28, %v2409_v61  ;;  %v1719_v3 = vpop.eup %1718  ;;  %vm2620_vm12 = vcmp.eq.f32.partialorder %v996_v62, 8.507059e+37  ;;  %v2624_v13 = vadd.f32 1.0, %v1717_v7  ;;  %v2632_v61 = vadd.f32 %v2629_v8, %v498_v4  ;;  %vm994_vm14 = vmor %vm992_vm7, %vm993_vm11 }
 0x118   : > { %v871_v56 = vadd.f32 %v1713_v29, %v870_v35  ;;  %v990_v16 = vmul.f32 %v1715_v59, %v989_v11  ;;  %v1108_v0 = vmul.f32 %v1719_v3, %v2567_v48  ;;  %v999_v30 = vor.u32 1.1754944e-38, %v998_v40 }
 0x119   : > { %v1490_v14 = vpack.c.bf16 %v1157_v24, %v1156_v42  ;;  %v1721_v10 = vpop.eup %1720  ;;  %v1116_v18 = vand.u32 2147483647, %v2567_v48  ;;  %v1118_v60 = vand.u32 2147483648, %v2567_v48  ;;  %1722 = vrcp.f32 %v2624_v13 }
 0x11a   : > { %v875_v6 = vsel %vm874_vm13, %v1713_v29, %v871_v56  ;;  %v991_v17 = vadd.f32 %v1715_v59, %v990_v16  ;;  %v1109_v26 = vsub.f32 1.0, %v1108_v0  ;;  %v506_v57 = vmul.f32 %v2616_v2, %v467_v12 }
 0x11b   : > { %1558 = vst [vmem:[%s2185_s27 + $0x10] sm:$0xff] %v1490_v14   ;;  %v880_v31 = vsel %vm2581_vm5, %v879_v44, %v875_v6  ;;  %v2648_v38 = vadd.f32 1.0, %v1721_v10  ;;  %v1443_v32 = vmul.f32 -1.442695, %v2632_v61  ;;  %v483_v33 = vmul.f32 %v2616_v2, %v409_v25 }
 0x11c   : > { %v1165_v34 = vmul.f32 %v880_v31, %v2424_v37  ;;  %v995_v46 = vsel %vm994_vm14, %v1715_v59, %v991_v17  ;;  %v1110_v45 = vmul.f32 %v1719_v3, %v1109_v26  ;;  %vm1113_vm15 = vweird.f32 %v1719_v3 }
 0x11d   : > { %v1105_v49 = vsel %vm2601_vm9, %v2544_v5, %v1100_v1  ;;  %v1000_v27 = vsel %vm2620_vm12, %v999_v30, %v995_v46  ;;  %vm1112_vm0 = vweird.f32 %v2567_v48  ;;  %1724 = vrcp.f32 %v2648_v38 }
 0x11e   : > { %v1510_v19 = vpack.c.bf16 %v1165_v34, %v2573_v51  ;;  %v1173_v29 = vmul.f32 %v1000_v27, %v2431_v9  ;;  %v1111_v37 = vadd.f32 %v1719_v3, %v1110_v45  ;;  %v491_v42 = vmul.f32 %v2616_v2, %v429_v22  ;;  %vm1114_vm1 = vmor %vm1112_vm0, %vm1113_vm15 }
 0x11f   : > { %v2663_v54 = vpop.eup %1722  ;;  %v1119_v55 = vor.u32 1.1754944e-38, %v1118_v60  ;;  %1726 = vpow2.f32 %v1443_v32  ;;  %v2666_v5 = vadd.f32 %v2629_v8, %v506_v57  ;;  %v2669_v48 = vadd.f32 %v2629_v8, %v483_v33 }
 0x120   : > { %1562 = vst [vmem:[%s2185_s27 + $0x30] sm:$0xff] %v1510_v19   ;;  %v1530_v51 = vpack.c.bf16 %v1173_v29, %v2586_v15  ;;  %v1115_v9 = vsel %vm1114_vm1, %v1719_v3, %v1111_v37  ;;  %vm1117_vm2 = vcmp.eq.f32.partialorder %v1116_v18, 8.507059e+37  ;;  %v763_v58 = vmul.f32 %v2663_v54, %v2624_v13 }
 0x121   : > { %v1180_v59 = vmul.f32 %v1105_v49, %v2406_v47  ;;  %v1120_v62 = vsel %vm1117_vm2, %v1119_v55, %v1115_v9  ;;  %v1451_v52 = vmul.f32 -1.442695, %v2666_v5  ;;  %v1428_v39 = vmul.f32 -1.442695, %v2669_v48 }
 0x122   : > { %1566 = vst [vmem:[%s2185_s27 + $0x50] sm:$0xff] %v1530_v51   ;;  %v1181_v23 = vmul.f32 %v1120_v62, %v2453_v43  ;;  %v764_v53 = vsub.f32 1.0, %v763_v58  ;;  %v2681_v15 = vadd.f32 %v2629_v8, %v491_v42  ;;  %v499_v44 = vmul.f32 %v2616_v2, %v449_v20 }
 0x123   : > { %v2684_v21 = vpop.eup %1724  ;;  %1728 = vpow2.f32 %v1451_v52  ;;  %v507_v47 = vmul.f32 %v2616_v2, %v469_v41  ;;  %vm767_vm3 = vweird.f32 %v2624_v13  ;;  %vm768_vm4 = vweird.f32 %v2663_v54 }
 0x124   : > { %v1550_v1 = vpack.c.bf16 %v1181_v23, %v1180_v59  ;;  %v765_v28 = vmul.f32 %v2663_v54, %v764_v53  ;;  %v883_v40 = vmul.f32 %v2684_v21, %v2648_v38  ;;  %1730 = vpow2.f32 %v1428_v39  ;;  %vm2713_vm5 = vmor %vm767_vm3, %vm768_vm4 }
 0x125   : > { %v1727_v4 = vpop.eup %1726  ;;  %v1436_v43 = vmul.f32 -1.442695, %v2681_v15  ;;  %v2692_v7 = vadd.f32 %v2629_v8, %v499_v44  ;;  %v2695_v24 = vadd.f32 %v2629_v8, %v507_v47  ;;  %v773_v14 = vand.u32 2147483648, %v2624_v13 }
 0x126   : > { %1570 = vst [vmem:[%s2185_s27 + $0x70] sm:$0xff] %v1550_v1   ;;  %v884_v35 = vsub.f32 1.0, %v883_v40  ;;  %v2698_v11 = vadd.f32 1.0, %v1727_v4  ;;  %v766_v3 = vadd.f32 %v2663_v54, %v765_v28  ;;  %v771_v56 = vand.u32 2147483647, %v2624_v13 }
 0x127   : > { %1732 = vpow2.f32 %v1436_v43  ;;  %v1444_v2 = vmul.f32 -1.442695, %v2692_v7  ;;  %v1452_v12 = vmul.f32 -1.442695, %v2695_v24  ;;  %vm887_vm6 = vweird.f32 %v2648_v38 }
 0x128   : > { %v885_v36 = vmul.f32 %v2684_v21, %v884_v35  ;;  %1734 = vrcp.f32 %v2698_v11  ;;  %v770_v10 = vsel %vm2713_vm5, %v2663_v54, %v766_v3  ;;  %vm888_vm7 = vweird.f32 %v2684_v21 }
 0x129   : > { %v1729_v8 = vpop.eup %1728  ;;  %1736 = vpow2.f32 %v1444_v2  ;;  %v774_v60 = vor.u32 1.1754944e-38, %v773_v14  ;;  %v891_v13 = vand.u32 2147483647, %v2648_v38  ;;  %v893_v6 = vand.u32 2147483648, %v2648_v38  ;;  %vm2735_vm9 = vmor %vm887_vm6, %vm888_vm7 }
 0x12a   : > { %v2709_v16 = vadd.f32 1.0, %v1729_v8  ;;  %1738 = vpow2.f32 %v1452_v12  ;;  %v1731_v0 = vpop.eup %1730  ;;  %v886_v30 = vadd.f32 %v2684_v21, %v885_v36  ;;  %vm772_vm8 = vcmp.eq.f32.partialorder %v771_v56, 8.507059e+37 }
 0x12b   : > { %v2726_v17 = vadd.f32 1.0, %v1731_v0  ;;  %v1013_v57 = vand.u32 2147483648, %v2698_v11  ;;  %v775_v33 = vsel %vm772_vm8, %v774_v60, %v770_v10  ;;  %vm892_vm10 = vcmp.eq.f32.partialorder %v891_v13, 8.507059e+37 }
 0x12c   : > { %1740 = vrcp.f32 %v2709_v16  ;;  %v890_v45 = vsel %vm2735_vm9, %v2684_v21, %v886_v30  ;;  %v894_v49 = vor.u32 1.1754944e-38, %v893_v6  ;;  %v1011_v38 = vand.u32 2147483647, %v2698_v11 }
 0x12d   : > { %v1733_v18 = vpop.eup %1732  ;;  %1742 = vrcp.f32 %v2726_v17  ;;  %v2750_v29 = vmul.f32 %v775_v33, %v2507_v50  ;;  %vm1007_vm11 = vweird.f32 %v2698_v11  ;;  %v2753_v37 = vor.u32 1.1754944e-38, %v1013_v57 }
 0x12e   : > { %v2728_v26 = vpop.eup %1734  ;;  %v2731_v31 = vadd.f32 1.0, %v1733_v18  ;;  %v895_v55 = vsel %vm892_vm10, %v894_v49, %v890_v45  ;;  %vm1127_vm12 = vweird.f32 %v2709_v16  ;;  %v1133_v51 = vand.u32 2147483648, %v2709_v16 }
 0x12f   : > { %v1737_v32 = vpop.eup %1736  ;;  %v1003_v34 = vmul.f32 %v2728_v26, %v2698_v11  ;;  %v1131_v9 = vand.u32 2147483647, %v2709_v16  ;;  %v786_v50 = vand.u32 2147483647, %v2726_v17  ;;  %v788_v58 = vand.u32 2147483648, %v2726_v17 }
 0x130   : > { %v1739_v46 = vpop.eup %1738  ;;  %1744 = vrcp.f32 %v2731_v31  ;;  %v2755_v42 = vadd.f32 1.0, %v1737_v32  ;;  %v906_v52 = vand.u32 2147483647, %v2731_v31  ;;  %v2771_v23 = vmul.f32 %v895_v55, %v2521_v63 }
 0x131   : > { %v1004_v27 = vsub.f32 1.0, %v1003_v34  ;;  %v2757_v54 = vadd.f32 1.0, %v1739_v46  ;;  %vm1008_vm13 = vweird.f32 %v2728_v26  ;;  %v908_v44 = vand.u32 2147483648, %v2731_v31 }
 0x132   : > { %v2747_v19 = vpop.eup %1740  ;;  %1746 = vrcp.f32 %v2755_v42  ;;  %v1134_v47 = vor.u32 1.1754944e-38, %v1133_v51  ;;  %vm782_vm14 = vweird.f32 %v2726_v17  ;;  %vm2779_vm15 = vcmp.eq.f32.partialorder %v786_v50, 8.507059e+37  ;;  %vm2803_vm6 = vmor %vm1007_vm11, %vm1008_vm13 }
 0x133   : > { %v1123_v20 = vmul.f32 %v2747_v19, %v2709_v16  ;;  %v1743_v41 = vpop.eup %1742  ;;  %v1005_v59 = vmul.f32 %v2728_v26, %v1004_v27  ;;  %1748 = vrcp.f32 %v2757_v54  ;;  %v789_v63 = vor.u32 1.1754944e-38, %v788_v58 }
 0x134   : > { %v778_v53 = vmul.f32 %v1743_v41, %v2726_v17  ;;  %vm902_vm0 = vweird.f32 %v2731_v31  ;;  %vm2785_vm1 = vcmp.eq.f32.partialorder %v1011_v38, 8.507059e+37  ;;  %vm1128_vm2 = vweird.f32 %v2747_v19 }
 0x135   : > { %v1124_v62 = vsub.f32 1.0, %v1123_v20  ;;  %v1006_v4 = vadd.f32 %v2728_v26, %v1005_v59  ;;  %vm2790_vm3 = vcmp.eq.f32.partialorder %v906_v52, 8.507059e+37  ;;  %vm2795_vm4 = vcmp.eq.f32.partialorder %v1131_v9, 8.507059e+37  ;;  %vm2813_vm9 = vmor %vm1127_vm12, %vm1128_vm2 }
 0x136   : > { %v1745_v39 = vpop.eup %1744  ;;  %v779_v28 = vsub.f32 1.0, %v778_v53  ;;  %vm783_vm5 = vweird.f32 %v1743_v41  ;;  %v909_v14 = vor.u32 1.1754944e-38, %v908_v44  ;;  %vm1022_vm8 = vweird.f32 %v2755_v42 }
 0x137   : > { %v1125_v21 = vmul.f32 %v2747_v19, %v1124_v62  ;;  %v898_v1 = vmul.f32 %v1745_v39, %v2731_v31  ;;  %vm903_vm7 = vweird.f32 %v1745_v39  ;;  %v1026_v11 = vand.u32 2147483647, %v2755_v42  ;;  %vm784_vm10 = vmor %vm782_vm14, %vm783_vm5 }
 0x138   : > { %v1747_v12 = vpop.eup %1746  ;;  %v780_v8 = vmul.f32 %v1743_v41, %v779_v28  ;;  %v1028_v60 = vand.u32 2147483648, %v2755_v42  ;;  %v1010_v6 = vsel %vm2803_vm6, %v2728_v26, %v1006_v4  ;;  %v1146_v32 = vand.u32 2147483647, %v2757_v54  ;;  %vm904_vm11 = vmor %vm902_vm0, %vm903_vm7 }
 0x139   : > { %v899_v35 = vsub.f32 1.0, %v898_v1  ;;  %v1126_v3 = vadd.f32 %v2747_v19, %v1125_v21  ;;  %v1749_v56 = vpop.eup %1748  ;;  %v1018_v10 = vmul.f32 %v1747_v12, %v2755_v42  ;;  %v1148_v46 = vand.u32 2147483648, %v2757_v54 }
 0x13a   : > { %v781_v18 = vadd.f32 %v1743_v41, %v780_v8  ;;  %v1138_v13 = vmul.f32 %v1749_v56, %v2757_v54  ;;  %vm1023_vm12 = vweird.f32 %v1747_v12  ;;  %vm1143_vm13 = vweird.f32 %v1749_v56 }
 0x13b   : > { %v900_v25 = vmul.f32 %v1745_v39, %v899_v35  ;;  %v1019_v57 = vsub.f32 1.0, %v1018_v10  ;;  %v1130_v33 = vsel %vm2813_vm9, %v2747_v19, %v1126_v3  ;;  %vm1027_vm14 = vcmp.eq.f32.partialorder %v1026_v11, 8.507059e+37 }
 0x13c   : > { %v785_v22 = vsel %vm784_vm10, %v1743_v41, %v781_v18  ;;  %v1139_v34 = vsub.f32 1.0, %v1138_v13  ;;  %vm1142_vm0 = vweird.f32 %v2757_v54  ;;  %v1015_v55 = vsel %vm2785_vm1, %v2753_v37, %v1010_v6 }
 0x13d   : > { %v901_v16 = vadd.f32 %v1745_v39, %v900_v25  ;;  %v790_v17 = vsel %vm2779_vm15, %v789_v63, %v785_v22  ;;  %v1020_v45 = vmul.f32 %v1747_v12, %v1019_v57  ;;  %vm1024_vm15 = vmor %vm1022_vm8, %vm1023_vm12  ;;  %v1149_v37 = vor.u32 1.1754944e-38, %v1148_v46 }
 0x13e   : > { %v1159_v49 = vmul.f32 %v790_v17, %v2669_v48  ;;  %v1140_v38 = vmul.f32 %v1749_v56, %v1139_v34  ;;  %v1029_v48 = vor.u32 1.1754944e-38, %v1028_v60  ;;  %vm1144_vm2 = vmor %vm1142_vm0, %vm1143_vm13  ;;  %vm1147_vm1 = vcmp.eq.f32.partialorder %v1146_v32, 8.507059e+37 }
 0x13f   : > { %v905_v26 = vsel %vm904_vm11, %v1745_v39, %v901_v16  ;;  %v1021_v19 = vadd.f32 %v1747_v12, %v1020_v45  ;;  %v1174_v50 = vmul.f32 %v1015_v55, %v2632_v61 }
 0x140   : > { %v910_v27 = vsel %vm2790_vm3, %v909_v14, %v905_v26  ;;  %v1495_v20 = vpack.c.bf16 %v1159_v49, %v2750_v29  ;;  %v1141_v51 = vadd.f32 %v1749_v56, %v1140_v38 }
 0x141   : > { %v1167_v31 = vmul.f32 %v910_v27, %v2681_v15  ;;  %v1135_v15 = vsel %vm2795_vm4, %v1134_v47, %v1130_v33  ;;  %v1025_v9 = vsel %vm1024_vm15, %v1747_v12, %v1021_v19 }
 0x142   : > { %1559 = vst [vmem:[%s2185_s27 + $0x18] sm:$0xff] %v1495_v20   ;;  %v1030_v29 = vsel %vm1027_vm14, %v1029_v48, %v1025_v9  ;;  %v1145_v42 = vsel %vm1144_vm2, %v1749_v56, %v1141_v51  ;;  %v1182_v59 = vmul.f32 %v1135_v15, %v2666_v5 }
 0x143   : > { %v1515_v54 = vpack.c.bf16 %v1167_v31, %v2771_v23  ;;  %v1175_v58 = vmul.f32 %v1030_v29, %v2692_v7  ;;  %v1150_v41 = vsel %vm1147_vm1, %v1149_v37, %v1145_v42 }
 0x144   : > { %v1183_v62 = vmul.f32 %v1150_v41, %v2695_v24 }
 0x145   : > { %1563 = vst [vmem:[%s2185_s27 + $0x38] sm:$0xff] %v1515_v54   ;;  %v1535_v52 = vpack.c.bf16 %v1175_v58, %v1174_v50 }
 0x146   : > { %v1555_v39 = vpack.c.bf16 %v1183_v62, %v1182_v59 }
 0x147   : > { %1567 = vst [vmem:[%s2185_s27 + $0x58] sm:$0xff] %v1535_v52  }
 0x148   : > { %1571 = vst [vmem:[%s2185_s27 + $0x78] sm:$0xff] %v1555_v39  }
 0x149   : > { %1779 = shalt.err (!%p1776_p3)
}
 0x14a   : > { %s1817_s22 = smov 64   ;;  %s1818_s27 = smov 4  }
 0x14b   : > { %1578 = dma.vmem_to_hbm [thread:$0]  (%p1882_p5), %s1262_s9, 2048, %s1264_s10, %s1249_s11, %s1817_s22, %s1817_s22, %s1818_s27  }
 0x14c PF: > { %p1584_p4 = scmp.ge.s32.totalorder %s1814_s18, 2  ;;  %s1278_s30 = sand.u32 1, %s1802_s15  }
 0x14d   : > { %s1279_s5 = scalar_lea.sflag [#allocation3], %s1278_s30 }
 0x14e   : > { %p1581_p7 = pnand %p1584_p4, %p1886_p6 }
 0x150   : > { %p1582_p8 = pneg %p1581_p7 }
 0x152   : > { %1797 = dma.done.wait (%p1582_p8), %s1279_s5, 2048  }
 0x153   : > { %1799 = vsyncadd (%p1582_p8), %s1279_s5, 4294965248  ;;  %p14_p9 = scmp.ge.s32.totalorder %s1869_s21, 10   ;;  %s2978_s15 = smov %s1806_s16 }
 0x154   : > { %s2979_s16 = smov %s1810_s17  ;;  %s2980_s17 = smov %s1880_s24 }
 0x155   : > { %s2981_s18 = smov %s1869_s21  ;;  %16 = sbr.rel (!%p14_p9) target bundleno = 3 (0x3), region = 71 }
 0x15a   :  { %1285 = vsyncpa [#allocation3], 1 }
 0x15b   :  { %1287 = vsyncpa [#allocation3 + $0x1], 1 }

</bundles_post_ra>
